<compile_context>
chip_gen: v7x
topology: tpu7x:2x2x1
jax: 0.10.0
libtpu: 0.0.40
codegen_flags: <defaults>
</compile_context>

<pallas_src>
import jax
import jax.numpy as jnp
from jax.experimental import pallas as pl
from jax.experimental.pallas import tpu as pltpu

# ---- small config consistent with a CLIP text encoder ----
VOCAB = 1000
SEQ = 8
DIM = 32
HEADS = 4
HEAD_DIM = DIM // HEADS
FFN = 4 * DIM
LAYERS = 2
PROJ = 32
EPS = 1e-5
BATCH = 2

# rows of the packed small-parameter table (per layer), each padded to 128 lanes
_ROWS_PER_LAYER = 8
(_R_LN1_G, _R_LN1_B, _R_BQKV, _R_BO,
 _R_LN2_G, _R_LN2_B, _R_B1, _R_B2) = range(_ROWS_PER_LAYER)
SMALL_ROWS = LAYERS * _ROWS_PER_LAYER + 2          # + final_g, final_b
SMALL_LANES = 128


def _layer_norm(x, g, b):
    mu = jnp.mean(x, axis=-1, keepdims=True)
    xc = x - mu
    var = jnp.mean(xc * xc, axis=-1, keepdims=True)
    return xc * jax.lax.rsqrt(var + EPS) * g + b


def _quick_gelu(x):
    # CLIP uses quick_gelu: x * sigmoid(1.702 * x)
    return x * jax.nn.sigmoid(1.702 * x)


# ----------------- fused Pallas kernel -----------------

def clip_text_forward_kernel(
    eot_ref,       # VMEM (B, 1) int32 : eot position per batch elem
    x_ref,         # VMEM (B*S, D) f32 : token + positional embeds
    small_ref,     # VMEM (SMALL_ROWS, 128) f32 : packed LN gains/biases + biases
    wqkv_ref,      # VMEM (L, D, 3D) bf16
    wo_ref,        # VMEM (L, D, D) bf16
    w1_ref,        # VMEM (L, D, F) bf16
    w2_ref,        # VMEM (L, F, D) bf16
    wproj_ref,     # VMEM (D, P) bf16
    packed_ref,    # out VMEM (B*S, (L+2)*D) f32 : [hs_0 | hs_1 | hs_2 | last_hidden]
    te_ref,        # out VMEM (B, P) f32 : text_embeds
):
    bf16 = jnp.bfloat16
    f32 = jnp.float32

    x = x_ref[...]                              # (B*S, D) f32
    bs = x.shape[0]
    b_sz = bs // SEQ
    hs = [x]                                    # hidden_states[0] = embeddings

    scale = 1.0 / (HEAD_DIM ** 0.5)
    row = jax.lax.broadcasted_iota(jnp.int32, (1, SEQ, SEQ), 1)
    col = jax.lax.broadcasted_iota(jnp.int32, (1, SEQ, SEQ), 2)
    causal = col <= row                         # (1, S, S), shared across (head, batch)

    def small(r, width):
        # static slice of the packed small-parameter table -> (1, width) f32
        return small_ref[r:r + 1, 0:width]

    for l in range(LAYERS):                     # static unroll (LAYERS = 2)
        base = l * _ROWS_PER_LAYER
        ln1_g = small(base + _R_LN1_G, DIM)
        ln1_b = small(base + _R_LN1_B, DIM)
        b_qkv = small(base + _R_BQKV, 3 * DIM)
        bo = small(base + _R_BO, DIM)
        ln2_g = small(base + _R_LN2_G, DIM)
        ln2_b = small(base + _R_LN2_B, DIM)
        b1 = small(base + _R_B1, FFN)
        b2 = small(base + _R_B2, DIM)

        # ---- self-attention block (pre-norm) ----
        h = _layer_norm(x, ln1_g, ln1_b)
        qkv = jnp.dot(h.astype(bf16), wqkv_ref[l],
                      preferred_element_type=f32) + b_qkv          # (B*S, 3D)
        q = qkv[:, 0:DIM] * scale
        k = qkv[:, DIM:2 * DIM]
        v = qkv[:, 2 * DIM:3 * DIM]

        # Stack per-head views on the LEADING axis -> (H*B, S, Hd); no
        # lane<->sublane relayout, then ONE batched score/softmax/PV pass.
        def heads(t):
            return jnp.concatenate(
                [t[:, hh * HEAD_DIM:(hh + 1) * HEAD_DIM]
                 .reshape(b_sz, SEQ, HEAD_DIM) for hh in range(HEADS)],
                axis=0).astype(bf16)

        q3, k3, v3 = heads(q), heads(k), heads(v)                  # (H*B, S, Hd)

        s = jnp.einsum("nqd,nkd->nqk", q3, k3,
                       preferred_element_type=f32)                 # (H*B, S, S)
        s = jnp.where(causal, s, -1e9)
        s = s - jnp.max(s, axis=-1, keepdims=True)
        e = jnp.exp(s)
        p = e * pl.reciprocal(jnp.sum(e, axis=-1, keepdims=True), approx=True)
        o = jnp.einsum("nqk,nkd->nqd", p.astype(bf16), v3,
                       preferred_element_type=f32)                 # (H*B, S, Hd)

        # lane-concat head outputs (XLU shifts) + single Wo matmul
        attn = jnp.concatenate(
            [o[hh * b_sz:(hh + 1) * b_sz].reshape(bs, HEAD_DIM)
             for hh in range(HEADS)], axis=-1)                     # (B*S, D)
        x = x + jnp.dot(attn.astype(bf16), wo_ref[l],
                        preferred_element_type=f32) + bo

        # ---- MLP block (pre-norm, quick-GELU) ----
        h2 = _layer_norm(x, ln2_g, ln2_b)
        f = jnp.dot(h2.astype(bf16), w1_ref[l],
                    preferred_element_type=f32) + b1               # (B*S, F)
        f = _quick_gelu(f)
        f = jnp.dot(f.astype(bf16), w2_ref[l],
                    preferred_element_type=f32) + b2
        x = x + f
        hs.append(x)

    # ---- final LayerNorm ----
    fin_g = small(LAYERS * _ROWS_PER_LAYER, DIM)
    fin_b = small(LAYERS * _ROWS_PER_LAYER + 1, DIM)
    lh = _layer_norm(x, fin_g, fin_b)

    # lane-dense single store: [hs_0 | hs_1 | hs_2 | last_hidden] = 128 lanes
    packed_ref[...] = jnp.concatenate(hs + [lh], axis=-1)

    # ---- eot-token pooling via one-hot selector + single projection ----
    rows_i = jax.lax.broadcasted_iota(jnp.int32, (b_sz, bs), 0)
    cols_i = jax.lax.broadcasted_iota(jnp.int32, (b_sz, bs), 1)
    onehot = (cols_i == rows_i * SEQ + eot_ref[...]).astype(f32)   # (B, B*S)
    pooled = jnp.dot(onehot, lh, preferred_element_type=f32)       # (B, D) exact rows
    te_ref[...] = jnp.dot(pooled.astype(bf16), wproj_ref[...],
                          preferred_element_type=f32)              # (B, P)


# ----------------- wrapper around the single pallas_call -----------------

def _fused_forward_pallas(x2, eot2d, p):
    bs = x2.shape[0]
    b_sz = bs // SEQ
    vmem = pl.BlockSpec(memory_space=pltpu.MemorySpace.VMEM)
    packed_width = (LAYERS + 2) * DIM
    return pl.pallas_call(
        clip_text_forward_kernel,
        out_shape=(
            jax.ShapeDtypeStruct((bs, packed_width), jnp.float32),  # hs + last_hidden
            jax.ShapeDtypeStruct((b_sz, PROJ), jnp.float32),        # text_embeds
        ),
        in_specs=[vmem] * 8,
        out_specs=(vmem, vmem),
    )(eot2d, x2, p["small"], p["w_qkv"], p["wo"], p["w1"], p["w2"], p["proj"])


# ----------------- parameter init + one-time packing -----------------

def init_params(key):
    def nrm(k, shape, std=0.02):
        return (std * jax.random.normal(k, shape)).astype(jnp.float32)

    keys = jax.random.split(key, 7)
    return {
        "token_emb": nrm(keys[0], (VOCAB, DIM)),
        "pos_emb": nrm(keys[1], (SEQ, DIM)),
        "ln1_g": jnp.ones((LAYERS, 1, DIM), jnp.float32),
        "ln1_b": jnp.zeros((LAYERS, 1, DIM), jnp.float32),
        "w_qkv": nrm(keys[2], (LAYERS, DIM, 3 * DIM)),        # fused Q/K/V
        "b_qkv": jnp.zeros((LAYERS, 1, 3 * DIM), jnp.float32),
        "wo": nrm(keys[3], (LAYERS, DIM, DIM)),
        "bo": jnp.zeros((LAYERS, 1, DIM), jnp.float32),
        "ln2_g": jnp.ones((LAYERS, 1, DIM), jnp.float32),
        "ln2_b": jnp.zeros((LAYERS, 1, DIM), jnp.float32),
        "w1": nrm(keys[4], (LAYERS, DIM, FFN)),
        "b1": jnp.zeros((LAYERS, 1, FFN), jnp.float32),
        "w2": nrm(keys[5], (LAYERS, FFN, DIM)),
        "b2": jnp.zeros((LAYERS, 1, DIM), jnp.float32),
        "final_g": jnp.ones((1, DIM), jnp.float32),
        "final_b": jnp.zeros((1, DIM), jnp.float32),
        "proj": nrm(keys[6], (DIM, PROJ)),
    }


def pack_params(p):
    """One-time packing: bf16 weights + one (18, 128) f32 small-param table."""
    bf16 = jnp.bfloat16

    def pad128(v):  # (1, n) -> (1, 128)
        return jnp.pad(v, ((0, 0), (0, SMALL_LANES - v.shape[-1])))

    rows = []
    for l in range(LAYERS):
        rows += [pad128(p["ln1_g"][l]), pad128(p["ln1_b"][l]),
                 pad128(p["b_qkv"][l]), pad128(p["bo"][l]),
                 pad128(p["ln2_g"][l]), pad128(p["ln2_b"][l]),
                 pad128(p["b1"][l]), pad128(p["b2"][l])]
    rows += [pad128(p["final_g"]), pad128(p["final_b"])]
    small = jnp.concatenate(rows, axis=0)                          # (18, 128) f32

    return {
        "token_emb": p["token_emb"],
        "pos_emb": p["pos_emb"],
        "small": small,
        "w_qkv": p["w_qkv"].astype(bf16),
        "wo": p["wo"].astype(bf16),
        "w1": p["w1"].astype(bf16),
        "w2": p["w2"].astype(bf16),
        "proj": p["proj"].astype(bf16),
    }


# ----------------- TextEncoderOutputWrapper.forward equivalent -----------------

def text_encoder_output_wrapper_forward(text_input_ids, params):
    """Returns (text_embeds, last_hidden_state, hidden_states) like
    CLIPTextModelOutput(text_embeds=out[0], last_hidden_state=out[1],
    hidden_states=out[2])."""
    B, S = text_input_ids.shape

    # embedding gather + positional add: plain-JAX glue (a 1000-row table
    # gather gains nothing from a Pallas kernel at this size)
    tok = jnp.take(params["token_emb"], text_input_ids, axis=0)     # (B, S, D)
    x = tok + params["pos_emb"][None, :S, :]
    x2 = x.reshape(B * S, DIM).astype(jnp.float32)

    # pooled token position = argmax of ids (legacy HF CLIP eot convention)
    # TODO(synk): padding/attention-mask handling is omitted (full-length
    # sequences assumed), matching the original behavior of this wrapper.
    eot2d = jnp.argmax(text_input_ids, axis=-1).astype(jnp.int32).reshape(B, 1)

    packed, text_embeds = _fused_forward_pallas(x2, eot2d, params)

    hidden_states = tuple(
        packed[:, i * DIM:(i + 1) * DIM].reshape(B, S, DIM)
        for i in range(LAYERS + 1))
    last_hidden_state = packed[:, (LAYERS + 1) * DIM:(LAYERS + 2) * DIM]
    last_hidden_state = last_hidden_state.reshape(B, S, DIM)
    return text_embeds, last_hidden_state, hidden_states


if __name__ == "__main__":
    key = jax.random.PRNGKey(0)
    pkey, ikey = jax.random.split(key)
    params = pack_params(init_params(pkey))
    text_input_ids = jax.random.randint(ikey, (BATCH, SEQ), 0, VOCAB,
                                        dtype=jnp.int32)

    fwd = jax.jit(text_encoder_output_wrapper_forward)
    text_embeds, last_hidden_state, hidden_states = fwd(text_input_ids, params)

    jax.block_until_ready(text_embeds)
    jax.block_until_ready(last_hidden_state)
    for h in hidden_states:
        jax.block_until_ready(h)

    assert text_embeds.shape == (BATCH, PROJ)
    assert last_hidden_state.shape == (BATCH, SEQ, DIM)
    assert len(hidden_states) == LAYERS + 1
    assert all(h.shape == (BATCH, SEQ, DIM) for h in hidden_states)
    print("KERNEL_OK")
</pallas_src>

<mosaic_0001>
module attributes {stable_mosaic.version = 11 : i64} {
  func.func @clip_text_forward_kernel(%arg0: memref<2x1xi32, #tpu.memory_space<vmem>>, %arg1: memref<16x32xf32, #tpu.memory_space<vmem>>, %arg2: memref<18x128xf32, #tpu.memory_space<vmem>>, %arg3: memref<2x32x96xbf16, #tpu.memory_space<vmem>>, %arg4: memref<2x32x32xbf16, #tpu.memory_space<vmem>>, %arg5: memref<2x32x128xbf16, #tpu.memory_space<vmem>>, %arg6: memref<2x128x32xbf16, #tpu.memory_space<vmem>>, %arg7: memref<32x32xbf16, #tpu.memory_space<vmem>>, %arg8: memref<16x128xf32, #tpu.memory_space<vmem>>, %arg9: memref<2x32xf32, #tpu.memory_space<vmem>>) attributes {dimension_semantics = [], scalar_prefetch = 0 : i64, scratch_operands = 0 : i64, tpu.core_type = #tpu.core_type<tc>} {
    %c0 = arith.constant 0 : index
    %c0_0 = arith.constant 0 : index
    %0 = vector.load %arg1[%c0, %c0_0] : memref<16x32xf32, #tpu.memory_space<vmem>>, vector<16x32xf32>
    %1 = tpu.iota {dimensions = array<i32: 1>} : vector<1x8x8xi32>
    %2 = tpu.iota {dimensions = array<i32: 2>} : vector<1x8x8xi32>
    %3 = arith.cmpi sle, %2, %1 : vector<1x8x8xi32>
    %c0_1 = arith.constant 0 : index
    %c0_2 = arith.constant 0 : index
    %4 = vector.load %arg2[%c0_1, %c0_2] : memref<18x128xf32, #tpu.memory_space<vmem>>, vector<1x32xf32>
    %c1 = arith.constant 1 : index
    %c0_3 = arith.constant 0 : index
    %5 = vector.load %arg2[%c1, %c0_3] : memref<18x128xf32, #tpu.memory_space<vmem>>, vector<1x32xf32>
    %c2 = arith.constant 2 : index
    %c0_4 = arith.constant 0 : index
    %6 = vector.load %arg2[%c2, %c0_4] : memref<18x128xf32, #tpu.memory_space<vmem>>, vector<1x96xf32>
    %c3 = arith.constant 3 : index
    %c0_5 = arith.constant 0 : index
    %7 = vector.load %arg2[%c3, %c0_5] : memref<18x128xf32, #tpu.memory_space<vmem>>, vector<1x32xf32>
    %c4 = arith.constant 4 : index
    %c0_6 = arith.constant 0 : index
    %8 = vector.load %arg2[%c4, %c0_6] : memref<18x128xf32, #tpu.memory_space<vmem>>, vector<1x32xf32>
    %c5 = arith.constant 5 : index
    %c0_7 = arith.constant 0 : index
    %9 = vector.load %arg2[%c5, %c0_7] : memref<18x128xf32, #tpu.memory_space<vmem>>, vector<1x32xf32>
    %c6 = arith.constant 6 : index
    %c0_8 = arith.constant 0 : index
    %10 = vector.load %arg2[%c6, %c0_8] : memref<18x128xf32, #tpu.memory_space<vmem>>, vector<1x128xf32>
    %c7 = arith.constant 7 : index
    %c0_9 = arith.constant 0 : index
    %11 = vector.load %arg2[%c7, %c0_9] : memref<18x128xf32, #tpu.memory_space<vmem>>, vector<1x32xf32>
    %cst = arith.constant dense<0.000000e+00> : vector<16xf32>
    %12 = vector.multi_reduction <add>, %0, %cst [1] : vector<16x32xf32> to vector<16xf32>
    %13 = vector.shape_cast %12 : vector<16xf32> to vector<16x1xf32>
    %cst_10 = arith.constant 3.200000e+01 : f32
    %14 = vector.broadcast %cst_10 : f32 to vector<16x1xf32>
    %15 = arith.divf %13, %14 : vector<16x1xf32>
    %16 = vector.broadcast %15 : vector<16x1xf32> to vector<16x32xf32>
    %17 = arith.subf %0, %16 : vector<16x32xf32>
    %18 = arith.mulf %17, %17 : vector<16x32xf32>
    %cst_11 = arith.constant dense<0.000000e+00> : vector<16xf32>
    %19 = vector.multi_reduction <add>, %18, %cst_11 [1] : vector<16x32xf32> to vector<16xf32>
    %20 = vector.shape_cast %19 : vector<16xf32> to vector<16x1xf32>
    %cst_12 = arith.constant 3.200000e+01 : f32
    %21 = vector.broadcast %cst_12 : f32 to vector<16x1xf32>
    %22 = arith.divf %20, %21 : vector<16x1xf32>
    %cst_13 = arith.constant 9.99999974E-6 : f32
    %23 = vector.broadcast %cst_13 : f32 to vector<16x1xf32>
    %24 = arith.addf %22, %23 : vector<16x1xf32>
    %25 = math.rsqrt %24 : vector<16x1xf32>
    %26 = vector.broadcast %25 : vector<16x1xf32> to vector<16x32xf32>
    %27 = arith.mulf %17, %26 : vector<16x32xf32>
    %28 = vector.broadcast %4 : vector<1x32xf32> to vector<16x32xf32>
    %29 = arith.mulf %27, %28 : vector<16x32xf32>
    %30 = vector.broadcast %5 : vector<1x32xf32> to vector<16x32xf32>
    %31 = arith.addf %29, %30 : vector<16x32xf32>
    %32 = arith.truncf %31 : vector<16x32xf32> to vector<16x32xbf16>
    %c0_14 = arith.constant 0 : index
    %c0_15 = arith.constant 0 : index
    %c0_16 = arith.constant 0 : index
    %33 = vector.load %arg3[%c0_14, %c0_15, %c0_16] : memref<2x32x96xbf16, #tpu.memory_space<vmem>>, vector<1x32x96xbf16>
    %34 = vector.shape_cast %33 : vector<1x32x96xbf16> to vector<32x96xbf16>
    %cst_17 = arith.constant dense<0.000000e+00> : vector<16x96xf32>
    %35 = tpu.matmul %32, %34, %cst_17 {dimension_numbers = #tpu.dot_dimension_numbers<[1], [0], [0], [1], [0, 0, 1, 1], [], []>} : vector<16x32xbf16>, vector<32x96xbf16>, vector<16x96xf32> -> vector<16x96xf32>
    %36 = vector.broadcast %6 : vector<1x96xf32> to vector<16x96xf32>
    %37 = arith.addf %35, %36 : vector<16x96xf32>
    %38 = vector.extract_strided_slice %37 {offsets = [0, 0], sizes = [16, 32], strides = [1, 1]} : vector<16x96xf32> to vector<16x32xf32>
    %cst_18 = arith.constant 0.353553385 : f32
    %39 = vector.broadcast %cst_18 : f32 to vector<16x32xf32>
    %40 = arith.mulf %38, %39 : vector<16x32xf32>
    %41 = vector.extract_strided_slice %37 {offsets = [0, 32], sizes = [16, 32], strides = [1, 1]} : vector<16x96xf32> to vector<16x32xf32>
    %42 = vector.extract_strided_slice %37 {offsets = [0, 64], sizes = [16, 32], strides = [1, 1]} : vector<16x96xf32> to vector<16x32xf32>
    %43 = vector.extract_strided_slice %40 {offsets = [0, 0], sizes = [16, 8], strides = [1, 1]} : vector<16x32xf32> to vector<16x8xf32>
    %44 = vector.shape_cast %43 : vector<16x8xf32> to vector<2x8x8xf32>
    %45 = vector.extract_strided_slice %40 {offsets = [0, 8], sizes = [16, 8], strides = [1, 1]} : vector<16x32xf32> to vector<16x8xf32>
    %46 = vector.shape_cast %45 : vector<16x8xf32> to vector<2x8x8xf32>
    %47 = vector.extract_strided_slice %40 {offsets = [0, 16], sizes = [16, 8], strides = [1, 1]} : vector<16x32xf32> to vector<16x8xf32>
    %48 = vector.shape_cast %47 : vector<16x8xf32> to vector<2x8x8xf32>
    %49 = vector.extract_strided_slice %40 {offsets = [0, 24], sizes = [16, 8], strides = [1, 1]} : vector<16x32xf32> to vector<16x8xf32>
    %50 = vector.shape_cast %49 : vector<16x8xf32> to vector<2x8x8xf32>
    %51 = tpu.concatenate %44, %46, %48, %50 in 0 : vector<2x8x8xf32>, vector<2x8x8xf32>, vector<2x8x8xf32>, vector<2x8x8xf32> -> vector<8x8x8xf32>
    %52 = arith.truncf %51 : vector<8x8x8xf32> to vector<8x8x8xbf16>
    %53 = vector.extract_strided_slice %41 {offsets = [0, 0], sizes = [16, 8], strides = [1, 1]} : vector<16x32xf32> to vector<16x8xf32>
    %54 = vector.shape_cast %53 : vector<16x8xf32> to vector<2x8x8xf32>
    %55 = vector.extract_strided_slice %41 {offsets = [0, 8], sizes = [16, 8], strides = [1, 1]} : vector<16x32xf32> to vector<16x8xf32>
    %56 = vector.shape_cast %55 : vector<16x8xf32> to vector<2x8x8xf32>
    %57 = vector.extract_strided_slice %41 {offsets = [0, 16], sizes = [16, 8], strides = [1, 1]} : vector<16x32xf32> to vector<16x8xf32>
    %58 = vector.shape_cast %57 : vector<16x8xf32> to vector<2x8x8xf32>
    %59 = vector.extract_strided_slice %41 {offsets = [0, 24], sizes = [16, 8], strides = [1, 1]} : vector<16x32xf32> to vector<16x8xf32>
    %60 = vector.shape_cast %59 : vector<16x8xf32> to vector<2x8x8xf32>
    %61 = tpu.concatenate %54, %56, %58, %60 in 0 : vector<2x8x8xf32>, vector<2x8x8xf32>, vector<2x8x8xf32>, vector<2x8x8xf32> -> vector<8x8x8xf32>
    %62 = arith.truncf %61 : vector<8x8x8xf32> to vector<8x8x8xbf16>
    %63 = vector.extract_strided_slice %42 {offsets = [0, 0], sizes = [16, 8], strides = [1, 1]} : vector<16x32xf32> to vector<16x8xf32>
    %64 = vector.shape_cast %63 : vector<16x8xf32> to vector<2x8x8xf32>
    %65 = vector.extract_strided_slice %42 {offsets = [0, 8], sizes = [16, 8], strides = [1, 1]} : vector<16x32xf32> to vector<16x8xf32>
    %66 = vector.shape_cast %65 : vector<16x8xf32> to vector<2x8x8xf32>
    %67 = vector.extract_strided_slice %42 {offsets = [0, 16], sizes = [16, 8], strides = [1, 1]} : vector<16x32xf32> to vector<16x8xf32>
    %68 = vector.shape_cast %67 : vector<16x8xf32> to vector<2x8x8xf32>
    %69 = vector.extract_strided_slice %42 {offsets = [0, 24], sizes = [16, 8], strides = [1, 1]} : vector<16x32xf32> to vector<16x8xf32>
    %70 = vector.shape_cast %69 : vector<16x8xf32> to vector<2x8x8xf32>
    %71 = tpu.concatenate %64, %66, %68, %70 in 0 : vector<2x8x8xf32>, vector<2x8x8xf32>, vector<2x8x8xf32>, vector<2x8x8xf32> -> vector<8x8x8xf32>
    %72 = arith.truncf %71 : vector<8x8x8xf32> to vector<8x8x8xbf16>
    "tpu.trace_start"() <{level = 10 : i32, message = "nqd,nkd->nqk"}> : () -> ()
    %cst_19 = arith.constant dense<0.000000e+00> : vector<8x8x8xf32>
    %73 = tpu.matmul %52, %62, %cst_19 {dimension_numbers = #tpu.dot_dimension_numbers<[2], [2], [1], [1], [0, 0, 0, 1, 1, 1], [0], [0]>} : vector<8x8x8xbf16>, vector<8x8x8xbf16>, vector<8x8x8xf32> -> vector<8x8x8xf32>
    %cst_20 = arith.constant -1.000000e+09 : f32
    "tpu.trace_stop"() : () -> ()
    %74 = vector.shape_cast %3 : vector<1x8x8xi1> to vector<1x8x8xi1>
    %75 = vector.broadcast %74 : vector<1x8x8xi1> to vector<8x8x8xi1>
    %76 = vector.broadcast %cst_20 : f32 to vector<8x8x8xf32>
    %77 = arith.select %75, %73, %76 : vector<8x8x8xi1>, vector<8x8x8xf32>
    %cst_21 = arith.constant dense<0xFF800000> : vector<8x8xf32>
    %78 = vector.multi_reduction <maximumf>, %77, %cst_21 [2] : vector<8x8x8xf32> to vector<8x8xf32>
    %79 = vector.shape_cast %78 : vector<8x8xf32> to vector<8x8x1xf32>
    %80 = vector.broadcast %79 : vector<8x8x1xf32> to vector<8x8x8xf32>
    %81 = arith.subf %77, %80 : vector<8x8x8xf32>
    %82 = math.exp %81 : vector<8x8x8xf32>
    %cst_22 = arith.constant dense<0.000000e+00> : vector<8x8xf32>
    %83 = vector.multi_reduction <add>, %82, %cst_22 [2] : vector<8x8x8xf32> to vector<8x8xf32>
    %84 = vector.shape_cast %83 : vector<8x8xf32> to vector<8x8x1xf32>
    %85 = tpu.reciprocal %84 {approx = true} : vector<8x8x1xf32> -> vector<8x8x1xf32>
    %86 = vector.broadcast %85 : vector<8x8x1xf32> to vector<8x8x8xf32>
    %87 = arith.mulf %82, %86 : vector<8x8x8xf32>
    %88 = arith.truncf %87 : vector<8x8x8xf32> to vector<8x8x8xbf16>
    "tpu.trace_start"() <{level = 10 : i32, message = "nqk,nkd->nqd"}> : () -> ()
    %cst_23 = arith.constant dense<0.000000e+00> : vector<8x8x8xf32>
    %89 = tpu.matmul %88, %72, %cst_23 {dimension_numbers = #tpu.dot_dimension_numbers<[2], [1], [1], [2], [0, 0, 0, 1, 1, 2], [0], [0]>} : vector<8x8x8xbf16>, vector<8x8x8xbf16>, vector<8x8x8xf32> -> vector<8x8x8xf32>
    "tpu.trace_stop"() : () -> ()
    %90 = vector.extract_strided_slice %89 {offsets = [0, 0, 0], sizes = [2, 8, 8], strides = [1, 1, 1]} : vector<8x8x8xf32> to vector<2x8x8xf32>
    %91 = vector.shape_cast %90 : vector<2x8x8xf32> to vector<16x8xf32>
    %92 = vector.extract_strided_slice %89 {offsets = [2, 0, 0], sizes = [2, 8, 8], strides = [1, 1, 1]} : vector<8x8x8xf32> to vector<2x8x8xf32>
    %93 = vector.shape_cast %92 : vector<2x8x8xf32> to vector<16x8xf32>
    %94 = vector.extract_strided_slice %89 {offsets = [4, 0, 0], sizes = [2, 8, 8], strides = [1, 1, 1]} : vector<8x8x8xf32> to vector<2x8x8xf32>
    %95 = vector.shape_cast %94 : vector<2x8x8xf32> to vector<16x8xf32>
    %96 = vector.extract_strided_slice %89 {offsets = [6, 0, 0], sizes = [2, 8, 8], strides = [1, 1, 1]} : vector<8x8x8xf32> to vector<2x8x8xf32>
    %97 = vector.shape_cast %96 : vector<2x8x8xf32> to vector<16x8xf32>
    %98 = tpu.concatenate %91, %93, %95, %97 in 1 : vector<16x8xf32>, vector<16x8xf32>, vector<16x8xf32>, vector<16x8xf32> -> vector<16x32xf32>
    %99 = arith.truncf %98 : vector<16x32xf32> to vector<16x32xbf16>
    %c0_24 = arith.constant 0 : index
    %c0_25 = arith.constant 0 : index
    %c0_26 = arith.constant 0 : index
    %100 = vector.load %arg4[%c0_24, %c0_25, %c0_26] : memref<2x32x32xbf16, #tpu.memory_space<vmem>>, vector<1x32x32xbf16>
    %101 = vector.shape_cast %100 : vector<1x32x32xbf16> to vector<32x32xbf16>
    %cst_27 = arith.constant dense<0.000000e+00> : vector<16x32xf32>
    %102 = tpu.matmul %99, %101, %cst_27 {dimension_numbers = #tpu.dot_dimension_numbers<[1], [0], [0], [1], [0, 0, 1, 1], [], []>} : vector<16x32xbf16>, vector<32x32xbf16>, vector<16x32xf32> -> vector<16x32xf32>
    %103 = arith.addf %0, %102 : vector<16x32xf32>
    %104 = vector.broadcast %7 : vector<1x32xf32> to vector<16x32xf32>
    %105 = arith.addf %103, %104 : vector<16x32xf32>
    %cst_28 = arith.constant dense<0.000000e+00> : vector<16xf32>
    %106 = vector.multi_reduction <add>, %105, %cst_28 [1] : vector<16x32xf32> to vector<16xf32>
    %107 = vector.shape_cast %106 : vector<16xf32> to vector<16x1xf32>
    %cst_29 = arith.constant 3.200000e+01 : f32
    %108 = vector.broadcast %cst_29 : f32 to vector<16x1xf32>
    %109 = arith.divf %107, %108 : vector<16x1xf32>
    %110 = vector.broadcast %109 : vector<16x1xf32> to vector<16x32xf32>
    %111 = arith.subf %105, %110 : vector<16x32xf32>
    %112 = arith.mulf %111, %111 : vector<16x32xf32>
    %cst_30 = arith.constant dense<0.000000e+00> : vector<16xf32>
    %113 = vector.multi_reduction <add>, %112, %cst_30 [1] : vector<16x32xf32> to vector<16xf32>
    %114 = vector.shape_cast %113 : vector<16xf32> to vector<16x1xf32>
    %cst_31 = arith.constant 3.200000e+01 : f32
    %115 = vector.broadcast %cst_31 : f32 to vector<16x1xf32>
    %116 = arith.divf %114, %115 : vector<16x1xf32>
    %cst_32 = arith.constant 9.99999974E-6 : f32
    %117 = vector.broadcast %cst_32 : f32 to vector<16x1xf32>
    %118 = arith.addf %116, %117 : vector<16x1xf32>
    %119 = math.rsqrt %118 : vector<16x1xf32>
    %120 = vector.broadcast %119 : vector<16x1xf32> to vector<16x32xf32>
    %121 = arith.mulf %111, %120 : vector<16x32xf32>
    %122 = vector.broadcast %8 : vector<1x32xf32> to vector<16x32xf32>
    %123 = arith.mulf %121, %122 : vector<16x32xf32>
    %124 = vector.broadcast %9 : vector<1x32xf32> to vector<16x32xf32>
    %125 = arith.addf %123, %124 : vector<16x32xf32>
    %126 = arith.truncf %125 : vector<16x32xf32> to vector<16x32xbf16>
    %c0_33 = arith.constant 0 : index
    %c0_34 = arith.constant 0 : index
    %c0_35 = arith.constant 0 : index
    %127 = vector.load %arg5[%c0_33, %c0_34, %c0_35] : memref<2x32x128xbf16, #tpu.memory_space<vmem>>, vector<1x32x128xbf16>
    %128 = vector.shape_cast %127 : vector<1x32x128xbf16> to vector<32x128xbf16>
    %cst_36 = arith.constant dense<0.000000e+00> : vector<16x128xf32>
    %129 = tpu.matmul %126, %128, %cst_36 {dimension_numbers = #tpu.dot_dimension_numbers<[1], [0], [0], [1], [0, 0, 1, 1], [], []>} : vector<16x32xbf16>, vector<32x128xbf16>, vector<16x128xf32> -> vector<16x128xf32>
    %130 = vector.broadcast %10 : vector<1x128xf32> to vector<16x128xf32>
    %131 = arith.addf %129, %130 : vector<16x128xf32>
    %cst_37 = arith.constant 1.702000e+00 : f32
    %132 = vector.broadcast %cst_37 : f32 to vector<16x128xf32>
    %133 = arith.mulf %132, %131 : vector<16x128xf32>
    %134 = arith.negf %133 : vector<16x128xf32>
    %135 = math.exp %134 : vector<16x128xf32>
    %cst_38 = arith.constant 1.000000e+00 : f32
    %136 = vector.broadcast %cst_38 : f32 to vector<16x128xf32>
    %137 = arith.addf %136, %135 : vector<16x128xf32>
    %138 = arith.divf %136, %137 : vector<16x128xf32>
    %139 = arith.mulf %131, %138 : vector<16x128xf32>
    %140 = arith.truncf %139 : vector<16x128xf32> to vector<16x128xbf16>
    %c0_39 = arith.constant 0 : index
    %c0_40 = arith.constant 0 : index
    %c0_41 = arith.constant 0 : index
    %141 = vector.load %arg6[%c0_39, %c0_40, %c0_41] : memref<2x128x32xbf16, #tpu.memory_space<vmem>>, vector<1x128x32xbf16>
    %142 = vector.shape_cast %141 : vector<1x128x32xbf16> to vector<128x32xbf16>
    %cst_42 = arith.constant dense<0.000000e+00> : vector<16x32xf32>
    %143 = tpu.matmul %140, %142, %cst_42 {dimension_numbers = #tpu.dot_dimension_numbers<[1], [0], [0], [1], [0, 0, 1, 1], [], []>} : vector<16x128xbf16>, vector<128x32xbf16>, vector<16x32xf32> -> vector<16x32xf32>
    %144 = vector.broadcast %11 : vector<1x32xf32> to vector<16x32xf32>
    %145 = arith.addf %143, %144 : vector<16x32xf32>
    %146 = arith.addf %105, %145 : vector<16x32xf32>
    %c8 = arith.constant 8 : index
    %c0_43 = arith.constant 0 : index
    %147 = vector.load %arg2[%c8, %c0_43] : memref<18x128xf32, #tpu.memory_space<vmem>>, vector<1x32xf32>
    %c9 = arith.constant 9 : index
    %c0_44 = arith.constant 0 : index
    %148 = vector.load %arg2[%c9, %c0_44] : memref<18x128xf32, #tpu.memory_space<vmem>>, vector<1x32xf32>
    %c10 = arith.constant 10 : index
    %c0_45 = arith.constant 0 : index
    %149 = vector.load %arg2[%c10, %c0_45] : memref<18x128xf32, #tpu.memory_space<vmem>>, vector<1x96xf32>
    %c11 = arith.constant 11 : index
    %c0_46 = arith.constant 0 : index
    %150 = vector.load %arg2[%c11, %c0_46] : memref<18x128xf32, #tpu.memory_space<vmem>>, vector<1x32xf32>
    %c12 = arith.constant 12 : index
    %c0_47 = arith.constant 0 : index
    %151 = vector.load %arg2[%c12, %c0_47] : memref<18x128xf32, #tpu.memory_space<vmem>>, vector<1x32xf32>
    %c13 = arith.constant 13 : index
    %c0_48 = arith.constant 0 : index
    %152 = vector.load %arg2[%c13, %c0_48] : memref<18x128xf32, #tpu.memory_space<vmem>>, vector<1x32xf32>
    %c14 = arith.constant 14 : index
    %c0_49 = arith.constant 0 : index
    %153 = vector.load %arg2[%c14, %c0_49] : memref<18x128xf32, #tpu.memory_space<vmem>>, vector<1x128xf32>
    %c15 = arith.constant 15 : index
    %c0_50 = arith.constant 0 : index
    %154 = vector.load %arg2[%c15, %c0_50] : memref<18x128xf32, #tpu.memory_space<vmem>>, vector<1x32xf32>
    %cst_51 = arith.constant dense<0.000000e+00> : vector<16xf32>
    %155 = vector.multi_reduction <add>, %146, %cst_51 [1] : vector<16x32xf32> to vector<16xf32>
    %156 = vector.shape_cast %155 : vector<16xf32> to vector<16x1xf32>
    %cst_52 = arith.constant 3.200000e+01 : f32
    %157 = vector.broadcast %cst_52 : f32 to vector<16x1xf32>
    %158 = arith.divf %156, %157 : vector<16x1xf32>
    %159 = vector.broadcast %158 : vector<16x1xf32> to vector<16x32xf32>
    %160 = arith.subf %146, %159 : vector<16x32xf32>
    %161 = arith.mulf %160, %160 : vector<16x32xf32>
    %cst_53 = arith.constant dense<0.000000e+00> : vector<16xf32>
    %162 = vector.multi_reduction <add>, %161, %cst_53 [1] : vector<16x32xf32> to vector<16xf32>
    %163 = vector.shape_cast %162 : vector<16xf32> to vector<16x1xf32>
    %cst_54 = arith.constant 3.200000e+01 : f32
    %164 = vector.broadcast %cst_54 : f32 to vector<16x1xf32>
    %165 = arith.divf %163, %164 : vector<16x1xf32>
    %cst_55 = arith.constant 9.99999974E-6 : f32
    %166 = vector.broadcast %cst_55 : f32 to vector<16x1xf32>
    %167 = arith.addf %165, %166 : vector<16x1xf32>
    %168 = math.rsqrt %167 : vector<16x1xf32>
    %169 = vector.broadcast %168 : vector<16x1xf32> to vector<16x32xf32>
    %170 = arith.mulf %160, %169 : vector<16x32xf32>
    %171 = vector.broadcast %147 : vector<1x32xf32> to vector<16x32xf32>
    %172 = arith.mulf %170, %171 : vector<16x32xf32>
    %173 = vector.broadcast %148 : vector<1x32xf32> to vector<16x32xf32>
    %174 = arith.addf %172, %173 : vector<16x32xf32>
    %175 = arith.truncf %174 : vector<16x32xf32> to vector<16x32xbf16>
    %c1_56 = arith.constant 1 : index
    %c0_57 = arith.constant 0 : index
    %c0_58 = arith.constant 0 : index
    %176 = vector.load %arg3[%c1_56, %c0_57, %c0_58] : memref<2x32x96xbf16, #tpu.memory_space<vmem>>, vector<1x32x96xbf16>
    %177 = vector.shape_cast %176 : vector<1x32x96xbf16> to vector<32x96xbf16>
    %cst_59 = arith.constant dense<0.000000e+00> : vector<16x96xf32>
    %178 = tpu.matmul %175, %177, %cst_59 {dimension_numbers = #tpu.dot_dimension_numbers<[1], [0], [0], [1], [0, 0, 1, 1], [], []>} : vector<16x32xbf16>, vector<32x96xbf16>, vector<16x96xf32> -> vector<16x96xf32>
    %179 = vector.broadcast %149 : vector<1x96xf32> to vector<16x96xf32>
    %180 = arith.addf %178, %179 : vector<16x96xf32>
    %181 = vector.extract_strided_slice %180 {offsets = [0, 0], sizes = [16, 32], strides = [1, 1]} : vector<16x96xf32> to vector<16x32xf32>
    %cst_60 = arith.constant 0.353553385 : f32
    %182 = vector.broadcast %cst_60 : f32 to vector<16x32xf32>
    %183 = arith.mulf %181, %182 : vector<16x32xf32>
    %184 = vector.extract_strided_slice %180 {offsets = [0, 32], sizes = [16, 32], strides = [1, 1]} : vector<16x96xf32> to vector<16x32xf32>
    %185 = vector.extract_strided_slice %180 {offsets = [0, 64], sizes = [16, 32], strides = [1, 1]} : vector<16x96xf32> to vector<16x32xf32>
    %186 = vector.extract_strided_slice %183 {offsets = [0, 0], sizes = [16, 8], strides = [1, 1]} : vector<16x32xf32> to vector<16x8xf32>
    %187 = vector.shape_cast %186 : vector<16x8xf32> to vector<2x8x8xf32>
    %188 = vector.extract_strided_slice %183 {offsets = [0, 8], sizes = [16, 8], strides = [1, 1]} : vector<16x32xf32> to vector<16x8xf32>
    %189 = vector.shape_cast %188 : vector<16x8xf32> to vector<2x8x8xf32>
    %190 = vector.extract_strided_slice %183 {offsets = [0, 16], sizes = [16, 8], strides = [1, 1]} : vector<16x32xf32> to vector<16x8xf32>
    %191 = vector.shape_cast %190 : vector<16x8xf32> to vector<2x8x8xf32>
    %192 = vector.extract_strided_slice %183 {offsets = [0, 24], sizes = [16, 8], strides = [1, 1]} : vector<16x32xf32> to vector<16x8xf32>
    %193 = vector.shape_cast %192 : vector<16x8xf32> to vector<2x8x8xf32>
    %194 = tpu.concatenate %187, %189, %191, %193 in 0 : vector<2x8x8xf32>, vector<2x8x8xf32>, vector<2x8x8xf32>, vector<2x8x8xf32> -> vector<8x8x8xf32>
    %195 = arith.truncf %194 : vector<8x8x8xf32> to vector<8x8x8xbf16>
    %196 = vector.extract_strided_slice %184 {offsets = [0, 0], sizes = [16, 8], strides = [1, 1]} : vector<16x32xf32> to vector<16x8xf32>
    %197 = vector.shape_cast %196 : vector<16x8xf32> to vector<2x8x8xf32>
    %198 = vector.extract_strided_slice %184 {offsets = [0, 8], sizes = [16, 8], strides = [1, 1]} : vector<16x32xf32> to vector<16x8xf32>
    %199 = vector.shape_cast %198 : vector<16x8xf32> to vector<2x8x8xf32>
    %200 = vector.extract_strided_slice %184 {offsets = [0, 16], sizes = [16, 8], strides = [1, 1]} : vector<16x32xf32> to vector<16x8xf32>
    %201 = vector.shape_cast %200 : vector<16x8xf32> to vector<2x8x8xf32>
    %202 = vector.extract_strided_slice %184 {offsets = [0, 24], sizes = [16, 8], strides = [1, 1]} : vector<16x32xf32> to vector<16x8xf32>
    %203 = vector.shape_cast %202 : vector<16x8xf32> to vector<2x8x8xf32>
    %204 = tpu.concatenate %197, %199, %201, %203 in 0 : vector<2x8x8xf32>, vector<2x8x8xf32>, vector<2x8x8xf32>, vector<2x8x8xf32> -> vector<8x8x8xf32>
    %205 = arith.truncf %204 : vector<8x8x8xf32> to vector<8x8x8xbf16>
    %206 = vector.extract_strided_slice %185 {offsets = [0, 0], sizes = [16, 8], strides = [1, 1]} : vector<16x32xf32> to vector<16x8xf32>
    %207 = vector.shape_cast %206 : vector<16x8xf32> to vector<2x8x8xf32>
    %208 = vector.extract_strided_slice %185 {offsets = [0, 8], sizes = [16, 8], strides = [1, 1]} : vector<16x32xf32> to vector<16x8xf32>
    %209 = vector.shape_cast %208 : vector<16x8xf32> to vector<2x8x8xf32>
    %210 = vector.extract_strided_slice %185 {offsets = [0, 16], sizes = [16, 8], strides = [1, 1]} : vector<16x32xf32> to vector<16x8xf32>
    %211 = vector.shape_cast %210 : vector<16x8xf32> to vector<2x8x8xf32>
    %212 = vector.extract_strided_slice %185 {offsets = [0, 24], sizes = [16, 8], strides = [1, 1]} : vector<16x32xf32> to vector<16x8xf32>
    %213 = vector.shape_cast %212 : vector<16x8xf32> to vector<2x8x8xf32>
    %214 = tpu.concatenate %207, %209, %211, %213 in 0 : vector<2x8x8xf32>, vector<2x8x8xf32>, vector<2x8x8xf32>, vector<2x8x8xf32> -> vector<8x8x8xf32>
    %215 = arith.truncf %214 : vector<8x8x8xf32> to vector<8x8x8xbf16>
    "tpu.trace_start"() <{level = 10 : i32, message = "nqd,nkd->nqk"}> : () -> ()
    %cst_61 = arith.constant dense<0.000000e+00> : vector<8x8x8xf32>
    %216 = tpu.matmul %195, %205, %cst_61 {dimension_numbers = #tpu.dot_dimension_numbers<[2], [2], [1], [1], [0, 0, 0, 1, 1, 1], [0], [0]>} : vector<8x8x8xbf16>, vector<8x8x8xbf16>, vector<8x8x8xf32> -> vector<8x8x8xf32>
    %cst_62 = arith.constant -1.000000e+09 : f32
    "tpu.trace_stop"() : () -> ()
    %217 = vector.shape_cast %3 : vector<1x8x8xi1> to vector<1x8x8xi1>
    %218 = vector.broadcast %217 : vector<1x8x8xi1> to vector<8x8x8xi1>
    %219 = vector.broadcast %cst_62 : f32 to vector<8x8x8xf32>
    %220 = arith.select %218, %216, %219 : vector<8x8x8xi1>, vector<8x8x8xf32>
    %cst_63 = arith.constant dense<0xFF800000> : vector<8x8xf32>
    %221 = vector.multi_reduction <maximumf>, %220, %cst_63 [2] : vector<8x8x8xf32> to vector<8x8xf32>
    %222 = vector.shape_cast %221 : vector<8x8xf32> to vector<8x8x1xf32>
    %223 = vector.broadcast %222 : vector<8x8x1xf32> to vector<8x8x8xf32>
    %224 = arith.subf %220, %223 : vector<8x8x8xf32>
    %225 = math.exp %224 : vector<8x8x8xf32>
    %cst_64 = arith.constant dense<0.000000e+00> : vector<8x8xf32>
    %226 = vector.multi_reduction <add>, %225, %cst_64 [2] : vector<8x8x8xf32> to vector<8x8xf32>
    %227 = vector.shape_cast %226 : vector<8x8xf32> to vector<8x8x1xf32>
    %228 = tpu.reciprocal %227 {approx = true} : vector<8x8x1xf32> -> vector<8x8x1xf32>
    %229 = vector.broadcast %228 : vector<8x8x1xf32> to vector<8x8x8xf32>
    %230 = arith.mulf %225, %229 : vector<8x8x8xf32>
    %231 = arith.truncf %230 : vector<8x8x8xf32> to vector<8x8x8xbf16>
    "tpu.trace_start"() <{level = 10 : i32, message = "nqk,nkd->nqd"}> : () -> ()
    %cst_65 = arith.constant dense<0.000000e+00> : vector<8x8x8xf32>
    %232 = tpu.matmul %231, %215, %cst_65 {dimension_numbers = #tpu.dot_dimension_numbers<[2], [1], [1], [2], [0, 0, 0, 1, 1, 2], [0], [0]>} : vector<8x8x8xbf16>, vector<8x8x8xbf16>, vector<8x8x8xf32> -> vector<8x8x8xf32>
    "tpu.trace_stop"() : () -> ()
    %233 = vector.extract_strided_slice %232 {offsets = [0, 0, 0], sizes = [2, 8, 8], strides = [1, 1, 1]} : vector<8x8x8xf32> to vector<2x8x8xf32>
    %234 = vector.shape_cast %233 : vector<2x8x8xf32> to vector<16x8xf32>
    %235 = vector.extract_strided_slice %232 {offsets = [2, 0, 0], sizes = [2, 8, 8], strides = [1, 1, 1]} : vector<8x8x8xf32> to vector<2x8x8xf32>
    %236 = vector.shape_cast %235 : vector<2x8x8xf32> to vector<16x8xf32>
    %237 = vector.extract_strided_slice %232 {offsets = [4, 0, 0], sizes = [2, 8, 8], strides = [1, 1, 1]} : vector<8x8x8xf32> to vector<2x8x8xf32>
    %238 = vector.shape_cast %237 : vector<2x8x8xf32> to vector<16x8xf32>
    %239 = vector.extract_strided_slice %232 {offsets = [6, 0, 0], sizes = [2, 8, 8], strides = [1, 1, 1]} : vector<8x8x8xf32> to vector<2x8x8xf32>
    %240 = vector.shape_cast %239 : vector<2x8x8xf32> to vector<16x8xf32>
    %241 = tpu.concatenate %234, %236, %238, %240 in 1 : vector<16x8xf32>, vector<16x8xf32>, vector<16x8xf32>, vector<16x8xf32> -> vector<16x32xf32>
    %242 = arith.truncf %241 : vector<16x32xf32> to vector<16x32xbf16>
    %c1_66 = arith.constant 1 : index
    %c0_67 = arith.constant 0 : index
    %c0_68 = arith.constant 0 : index
    %243 = vector.load %arg4[%c1_66, %c0_67, %c0_68] : memref<2x32x32xbf16, #tpu.memory_space<vmem>>, vector<1x32x32xbf16>
    %244 = vector.shape_cast %243 : vector<1x32x32xbf16> to vector<32x32xbf16>
    %cst_69 = arith.constant dense<0.000000e+00> : vector<16x32xf32>
    %245 = tpu.matmul %242, %244, %cst_69 {dimension_numbers = #tpu.dot_dimension_numbers<[1], [0], [0], [1], [0, 0, 1, 1], [], []>} : vector<16x32xbf16>, vector<32x32xbf16>, vector<16x32xf32> -> vector<16x32xf32>
    %246 = arith.addf %146, %245 : vector<16x32xf32>
    %247 = vector.broadcast %150 : vector<1x32xf32> to vector<16x32xf32>
    %248 = arith.addf %246, %247 : vector<16x32xf32>
    %cst_70 = arith.constant dense<0.000000e+00> : vector<16xf32>
    %249 = vector.multi_reduction <add>, %248, %cst_70 [1] : vector<16x32xf32> to vector<16xf32>
    %250 = vector.shape_cast %249 : vector<16xf32> to vector<16x1xf32>
    %cst_71 = arith.constant 3.200000e+01 : f32
    %251 = vector.broadcast %cst_71 : f32 to vector<16x1xf32>
    %252 = arith.divf %250, %251 : vector<16x1xf32>
    %253 = vector.broadcast %252 : vector<16x1xf32> to vector<16x32xf32>
    %254 = arith.subf %248, %253 : vector<16x32xf32>
    %255 = arith.mulf %254, %254 : vector<16x32xf32>
    %cst_72 = arith.constant dense<0.000000e+00> : vector<16xf32>
    %256 = vector.multi_reduction <add>, %255, %cst_72 [1] : vector<16x32xf32> to vector<16xf32>
    %257 = vector.shape_cast %256 : vector<16xf32> to vector<16x1xf32>
    %cst_73 = arith.constant 3.200000e+01 : f32
    %258 = vector.broadcast %cst_73 : f32 to vector<16x1xf32>
    %259 = arith.divf %257, %258 : vector<16x1xf32>
    %cst_74 = arith.constant 9.99999974E-6 : f32
    %260 = vector.broadcast %cst_74 : f32 to vector<16x1xf32>
    %261 = arith.addf %259, %260 : vector<16x1xf32>
    %262 = math.rsqrt %261 : vector<16x1xf32>
    %263 = vector.broadcast %262 : vector<16x1xf32> to vector<16x32xf32>
    %264 = arith.mulf %254, %263 : vector<16x32xf32>
    %265 = vector.broadcast %151 : vector<1x32xf32> to vector<16x32xf32>
    %266 = arith.mulf %264, %265 : vector<16x32xf32>
    %267 = vector.broadcast %152 : vector<1x32xf32> to vector<16x32xf32>
    %268 = arith.addf %266, %267 : vector<16x32xf32>
    %269 = arith.truncf %268 : vector<16x32xf32> to vector<16x32xbf16>
    %c1_75 = arith.constant 1 : index
    %c0_76 = arith.constant 0 : index
    %c0_77 = arith.constant 0 : index
    %270 = vector.load %arg5[%c1_75, %c0_76, %c0_77] : memref<2x32x128xbf16, #tpu.memory_space<vmem>>, vector<1x32x128xbf16>
    %271 = vector.shape_cast %270 : vector<1x32x128xbf16> to vector<32x128xbf16>
    %cst_78 = arith.constant dense<0.000000e+00> : vector<16x128xf32>
    %272 = tpu.matmul %269, %271, %cst_78 {dimension_numbers = #tpu.dot_dimension_numbers<[1], [0], [0], [1], [0, 0, 1, 1], [], []>} : vector<16x32xbf16>, vector<32x128xbf16>, vector<16x128xf32> -> vector<16x128xf32>
    %273 = vector.broadcast %153 : vector<1x128xf32> to vector<16x128xf32>
    %274 = arith.addf %272, %273 : vector<16x128xf32>
    %cst_79 = arith.constant 1.702000e+00 : f32
    %275 = vector.broadcast %cst_79 : f32 to vector<16x128xf32>
    %276 = arith.mulf %275, %274 : vector<16x128xf32>
    %277 = arith.negf %276 : vector<16x128xf32>
    %278 = math.exp %277 : vector<16x128xf32>
    %cst_80 = arith.constant 1.000000e+00 : f32
    %279 = vector.broadcast %cst_80 : f32 to vector<16x128xf32>
    %280 = arith.addf %279, %278 : vector<16x128xf32>
    %281 = arith.divf %279, %280 : vector<16x128xf32>
    %282 = arith.mulf %274, %281 : vector<16x128xf32>
    %283 = arith.truncf %282 : vector<16x128xf32> to vector<16x128xbf16>
    %c1_81 = arith.constant 1 : index
    %c0_82 = arith.constant 0 : index
    %c0_83 = arith.constant 0 : index
    %284 = vector.load %arg6[%c1_81, %c0_82, %c0_83] : memref<2x128x32xbf16, #tpu.memory_space<vmem>>, vector<1x128x32xbf16>
    %285 = vector.shape_cast %284 : vector<1x128x32xbf16> to vector<128x32xbf16>
    %cst_84 = arith.constant dense<0.000000e+00> : vector<16x32xf32>
    %286 = tpu.matmul %283, %285, %cst_84 {dimension_numbers = #tpu.dot_dimension_numbers<[1], [0], [0], [1], [0, 0, 1, 1], [], []>} : vector<16x128xbf16>, vector<128x32xbf16>, vector<16x32xf32> -> vector<16x32xf32>
    %287 = vector.broadcast %154 : vector<1x32xf32> to vector<16x32xf32>
    %288 = arith.addf %286, %287 : vector<16x32xf32>
    %289 = arith.addf %248, %288 : vector<16x32xf32>
    %c16 = arith.constant 16 : index
    %c0_85 = arith.constant 0 : index
    %290 = vector.load %arg2[%c16, %c0_85] : memref<18x128xf32, #tpu.memory_space<vmem>>, vector<1x32xf32>
    %c17 = arith.constant 17 : index
    %c0_86 = arith.constant 0 : index
    %291 = vector.load %arg2[%c17, %c0_86] : memref<18x128xf32, #tpu.memory_space<vmem>>, vector<1x32xf32>
    %cst_87 = arith.constant dense<0.000000e+00> : vector<16xf32>
    %292 = vector.multi_reduction <add>, %289, %cst_87 [1] : vector<16x32xf32> to vector<16xf32>
    %293 = vector.shape_cast %292 : vector<16xf32> to vector<16x1xf32>
    %cst_88 = arith.constant 3.200000e+01 : f32
    %294 = vector.broadcast %cst_88 : f32 to vector<16x1xf32>
    %295 = arith.divf %293, %294 : vector<16x1xf32>
    %296 = vector.broadcast %295 : vector<16x1xf32> to vector<16x32xf32>
    %297 = arith.subf %289, %296 : vector<16x32xf32>
    %298 = arith.mulf %297, %297 : vector<16x32xf32>
    %cst_89 = arith.constant dense<0.000000e+00> : vector<16xf32>
    %299 = vector.multi_reduction <add>, %298, %cst_89 [1] : vector<16x32xf32> to vector<16xf32>
    %300 = vector.shape_cast %299 : vector<16xf32> to vector<16x1xf32>
    %cst_90 = arith.constant 3.200000e+01 : f32
    %301 = vector.broadcast %cst_90 : f32 to vector<16x1xf32>
    %302 = arith.divf %300, %301 : vector<16x1xf32>
    %cst_91 = arith.constant 9.99999974E-6 : f32
    %303 = vector.broadcast %cst_91 : f32 to vector<16x1xf32>
    %304 = arith.addf %302, %303 : vector<16x1xf32>
    %305 = math.rsqrt %304 : vector<16x1xf32>
    %306 = vector.broadcast %305 : vector<16x1xf32> to vector<16x32xf32>
    %307 = arith.mulf %297, %306 : vector<16x32xf32>
    %308 = vector.broadcast %290 : vector<1x32xf32> to vector<16x32xf32>
    %309 = arith.mulf %307, %308 : vector<16x32xf32>
    %310 = vector.broadcast %291 : vector<1x32xf32> to vector<16x32xf32>
    %311 = arith.addf %309, %310 : vector<16x32xf32>
    %312 = tpu.concatenate %0, %146, %289, %311 in 1 : vector<16x32xf32>, vector<16x32xf32>, vector<16x32xf32>, vector<16x32xf32> -> vector<16x128xf32>
    %c0_92 = arith.constant 0 : index
    %c0_93 = arith.constant 0 : index
    %313 = vector.load %arg8[%c0_92, %c0_93] : memref<16x128xf32, #tpu.memory_space<vmem>>, vector<16x128xf32>
    tpu.vector_store %arg8[%c0_92, %c0_93], %312 {strides = array<i32>} : memref<16x128xf32, #tpu.memory_space<vmem>>, vector<16x128xf32>,
    %314 = tpu.iota {dimensions = array<i32: 0>} : vector<2x16xi32>
    %315 = tpu.iota {dimensions = array<i32: 1>} : vector<2x16xi32>
    %c8_i32 = arith.constant 8 : i32
    %316 = vector.broadcast %c8_i32 : i32 to vector<2x16xi32>
    %317 = arith.muli %314, %316 : vector<2x16xi32>
    %c0_94 = arith.constant 0 : index
    %c0_95 = arith.constant 0 : index
    %318 = vector.load %arg0[%c0_94, %c0_95] : memref<2x1xi32, #tpu.memory_space<vmem>>, vector<2x1xi32>
    %319 = vector.broadcast %318 : vector<2x1xi32> to vector<2x16xi32>
    %320 = arith.addi %317, %319 : vector<2x16xi32>
    %321 = arith.cmpi eq, %315, %320 : vector<2x16xi32>
    %322 = arith.extui %321 : vector<2x16xi1> to vector<2x16xi32>
    %323 = arith.sitofp %322 : vector<2x16xi32> to vector<2x16xf32>
    %cst_96 = arith.constant dense<0.000000e+00> : vector<2x32xf32>
    %324 = tpu.matmul %323, %311, %cst_96 {dimension_numbers = #tpu.dot_dimension_numbers<[1], [0], [0], [1], [0, 0, 1, 1], [], []>} : vector<2x16xf32>, vector<16x32xf32>, vector<2x32xf32> -> vector<2x32xf32>
    %325 = arith.truncf %324 : vector<2x32xf32> to vector<2x32xbf16>
    %c0_97 = arith.constant 0 : index
    %c0_98 = arith.constant 0 : index
    %326 = vector.load %arg7[%c0_97, %c0_98] : memref<32x32xbf16, #tpu.memory_space<vmem>>, vector<32x32xbf16>
    %cst_99 = arith.constant dense<0.000000e+00> : vector<2x32xf32>
    %327 = tpu.matmul %325, %326, %cst_99 {dimension_numbers = #tpu.dot_dimension_numbers<[1], [0], [0], [1], [0, 0, 1, 1], [], []>} : vector<2x32xbf16>, vector<32x32xbf16>, vector<2x32xf32> -> vector<2x32xf32>
    %c0_100 = arith.constant 0 : index
    %c0_101 = arith.constant 0 : index
    %328 = vector.load %arg9[%c0_100, %c0_101] : memref<2x32xf32, #tpu.memory_space<vmem>>, vector<2x32xf32>
    tpu.vector_store %arg9[%c0_100, %c0_101], %327 {strides = array<i32>} : memref<2x32xf32, #tpu.memory_space<vmem>>, vector<2x32xf32>,
    return
  }
}

</mosaic_0001>

<bundles_post_ra>
// kernel: text_encoder_output_wrapper_forward.1
= control target key start
LH: loop header
LB: loop body
LE: loop exit
PB: predicated region body
PF: predicated region fallthrough
CT: control target
= control target key end

     0   :  { %vm48_vm0 = vcmask 261120   ;;  %s4640_s0 = inlined_call_operand.vmem [shape: s32[2,1], index: 0, kind: input, shape index: {}]   ;;  %s4641_s1 = inlined_call_operand.vmem [shape: f32[16,32], index: 1, kind: input, shape index: {}]   ;;  %s4642_s2 = inlined_call_operand.vmem [shape: f32[18,128], index: 2, kind: input, shape index: {}]   ;;  %s4643_s3 = inlined_call_operand.vmem [shape: bf16[2,32,96], index: 3, kind: input, shape index: {}]   ;;  %s4644_s4 = inlined_call_operand.vmem [shape: bf16[2,32,32], index: 4, kind: input, shape index: {}]   ;;  %s4645_s5 = inlined_call_operand.vmem [shape: bf16[2,32,128], index: 5, kind: input, shape index: {}]   ;;  %s4646_s6 = inlined_call_operand.vmem [shape: bf16[2,128,32], index: 6, kind: input, shape index: {}]   ;;  %s4647_s7 = inlined_call_operand.vmem [shape: bf16[32,32], index: 7, kind: input, shape index: {}]   ;;  %s4648_s8 = inlined_call_operand.vmem [shape: f32[16,128], index: 8, kind: output, shape index: {0}]   ;;  %s4649_s9 = inlined_call_operand.hbm [shape: f32[2,32], index: 9, kind: output, shape index: {1}]  }
   0x1   :  { %v33_v0 = vld [vmem:[%s4641_s1] sm:$0xff]  ;;  %v34_v1 = vld [vmem:[%s4641_s1 + $0x8] sm:$0xff] }
   0x2   :  { %v49_v2 = vsel %vm48_vm0, %v33_v0, 0.0  ;;  %v52_v3 = vsel %vm48_vm0, %v34_v1, 0.0 }
   0x3   :  { %50 = vadd.xlane.f32.xlu0 %v49_v2 }
   0x7   :  { %53 = vadd.xlane.f32.xlu0 %v52_v3 }
   0x8   :  { %15 = vsyncpa [#allocation3], 0  ;;  %v3676_v14 = vld [vmem:[%s4643_s3] sm:$0xff]   ;;  %v3834_v15 = vmov 0.0   ;;  %vm3835_vm1 = vmmov 0   ;;  %v3677_v16 = vld [vmem:[%s4643_s3 + $0x8] sm:$0xff]  }
   0x9   :  { %3273 = vmatprep.subr.bf16.mxu1 %v3834_v15  ;;  %3277 = vmatprep.mubr.msk.bf16.mxu1 %vm3835_vm1, %v3834_v15  ;;  %v3046_v25 = vld [vmem:[%s4642_s2] ss:$0 sm:$0xff]  ;;  %v3047_v29 = vld [vmem:[%s4642_s2 + $0x1] ss:$0 sm:$0xff]  ;;  %v3048_v34 = vld [vmem:[%s4642_s2 + $0x2] ss:$0 sm:$0xff] }
   0xa   :  { %3274 = vmatpush3.bf16.msra.mxu1 %v3676_v14  ;;  %3287 = vmatprep.subr.bf16.mxu0 %v3834_v15  ;;  %s3836_s23 = smov 112   ;;  %s3837_s24 = smov 120   ;;  %vm214_vm2 = vcmask 64512   ;;  %vm715_vm4 = vcmask 1043456   ;;  %vm1121_vm5 = vcmask 130048   ;;  %vm1124_vm6 = vcmask 195584  }
   0xb   :  { %3275 = vmatprep.subr.bf16.mxu1 %v3834_v15  ;;  %3289 = vmatprep.mubr.msk.bf16.mxu0 %vm3835_vm1, %v3834_v15  ;;  %s3838_s25 = smov 104   ;;  %s3839_s26 = smov 96   ;;  %vm2876_vm8 = vcmask 523264   ;;  %vm2879_vm9 = vcmask 785408   ;;  %vm3026_vm10 = vcmask 254976  }
   0xc   :  { %s3840_s27 = smov 64   ;;  %s3841_s28 = smov 8  }
   0xd   :  { %s3842_s10 = smov 16   ;;  %s3843_s13 = smov 24  }
   0xe   :  { %3276 = vmatpush3.bf16.msra.mxu1 %v3677_v16  ;;  %s3845_s22 = smov 32   ;;  %s3847_s18 = smov [#allocation2]  }
   0xf   :  { %3281 = vmatprep.subr.bf16.mxu1 %v3834_v15 }
  0x90   :  { %v51_v4 = vpop.xlane.xlu0 %50 }
  0x91   :  { %v56_v5 = vmul.f32 0.03125, %v51_v4 }
  0x93   :  { %v58_v6 = vsub.f32 %v33_v0, %v56_v5 }
  0x94   :  { %v54_v7 = vpop.xlane.xlu0 %53 }
  0x95   :  { %v57_v8 = vmul.f32 0.03125, %v54_v7  ;;  %v60_v9 = vmul.f32 %v58_v6, %v58_v6 }
  0x97   :  { %v59_v10 = vsub.f32 %v34_v1, %v57_v8  ;;  %v62_v11 = vsel %vm48_vm0, %v60_v9, 0.0 }
  0x98   :  { %63 = vadd.xlane.f32.xlu1 %v62_v11 }
  0x99   :  { %v61_v12 = vmul.f32 %v59_v10, %v59_v10 }
  0x9b   :  { %v65_v13 = vsel %vm48_vm0, %v61_v12, 0.0 }
  0x9c   :  { %66 = vadd.xlane.f32.xlu1 %v65_v13 }
 0x125   :  { %v64_v17 = vpop.xlane.xlu1 %63 }
 0x126   :  { %v68_v18 = vmul.f32 0.03125, %v64_v17 }
 0x128   :  { %v70_v19 = vadd.f32 1e-05, %v68_v18 }
 0x129   :  { %v67_v20 = vpop.xlane.xlu1 %66 }
 0x12a   :  { %3706 = vrsqrt.f32 %v70_v19  ;;  %v69_v21 = vmul.f32 0.03125, %v67_v20 }
 0x12c   :  { %v71_v22 = vadd.f32 1e-05, %v69_v21 }
 0x12e   :  { %3708 = vrsqrt.f32 %v71_v22 }
 0x134   :  { %v3707_v23 = vpop.eup %3706 }
 0x135   :  { %v74_v24 = vmul.f32 %v3707_v23, %v58_v6 }
 0x137   :  { %v80_v28 = vmul.f32 %v3046_v25, %v74_v24 }
 0x138   :  { %v3709_v26 = vpop.eup %3708 }
 0x139   :  { %v75_v27 = vmul.f32 %v3709_v26, %v59_v10  ;;  %v86_v31 = vadd.f32 %v3047_v29, %v80_v28 }
 0x13b   :  { %v81_v30 = vmul.f32 %v3046_v25, %v75_v27 }
 0x13d   :  { %v87_v32 = vadd.f32 %v3047_v29, %v81_v30 }
 0x13f   :  { %v88_v33 = vpack.c.bf16 %v87_v32, %v86_v31  ;;  %v35_v32 = vlaneseq }
 0x141   :  { %3278 = vmatmul.mubr.msk.bf16.vlgmr.msra.gmra.mrb[0].mxu1 %vm48_vm0, %v88_v33  ;;  %v4012_v33 = vshrl.u32 %v35_v32, 7 }
 0x142   :  { %3283 = vmatprep.mubr.msk.bf16.mxu1 %vm3835_vm1, %v3834_v15 }
 0x214   :  { %v146_v35 = vpop.f32.mrb[0].mxu1 }
 0x215   :  { %v3279_v36 = vpop.f32.mrb[1].mxu1  ;;  %v147_v37 = vadd.f32 %v3048_v34, %v146_v35 }
 0x216   :  { %v149_v38 = vpop.f32.mrb[2].mxu1 }
 0x217   :  { %v150_v39 = vadd.f32 %v3048_v34, %v149_v38  ;;  %v3280_v40 = vpop.f32.mrb[3].mxu1  ;;  %v153_v42 = vmul.f32 0.35355338, %v147_v37  ;;  %v3941_v46 = vpack.c.bf16 %v147_v37, %v147_v37  ;;  %v4014_v34 = vand.u32 127, %v35_v32 }
 0x219   :  { %v3590_v41 = vpack.i.bf16 %v150_v39, %v147_v37  ;;  %v154_v43 = vmul.f32 0.35355338, %v150_v39  ;;  %v3936_v45 = vpack.c.bf16 %v150_v39, %v150_v39  ;;  %v175_v1 = vpack.c.bf16 %v153_v42, %v153_v42 }
 0x21a   :  { %vm4018_vm3 = vcmp.le.s32.totalorder %v4014_v34, %v4012_v33 }
 0x21b   :  { %3591 = vrot.lane.b32.xlu1 %v3590_v41, %s3836_s23  ;;  %3586 = vrot.lane.b32.xlu0 %v3590_v41, %s3837_s24  ;;  %v3600_v44 = vpack.i.bf16 %v154_v43, %v153_v42  ;;  %v176_v0 = vpack.c.bf16 %v154_v43, %v154_v43 }
 0x21f   :  { %3596 = vrot.lane.b32.xlu1 %v3590_v41, %s3838_s25  ;;  %262 = vrot.lane.b32.xlu0 %v3936_v45, %s3839_s26 }
 0x223   :  { %212 = vrot.lane.b32.xlu1 %v3941_v46, %s3839_s26 }
 0x28d   :  { %v3592_v47 = vpop.permute.xlu1 %3591  ;;  %v3587_v48 = vpop.permute.xlu0 %3586 }
 0x28e   :  { %v3589_v49 = vunpack.i.h.bf16 %v3587_v48  ;;  %v3588_v50 = vunpack.i.l.bf16 %v3587_v48  ;;  %v3593_v51 = vunpack.i.l.bf16 %v3592_v47  ;;  %v3594_v57 = vunpack.i.h.bf16 %v3592_v47 }
 0x290   :  { %v3945_v52 = vpack.c.bf16 %v3588_v50, %v3588_v50  ;;  %v3947_v53 = vpack.c.bf16 %v3589_v49, %v3589_v49  ;;  %v3954_v58 = vpack.c.bf16 %v3593_v51, %v3593_v51  ;;  %v3961_v62 = vpack.c.bf16 %v3594_v57, %v3594_v57 }
 0x291   :  { %v3597_v54 = vpop.permute.xlu1 %3596  ;;  %v263_v55 = vpop.permute.xlu0 %262 }
 0x292   :  { %311 = vrot.lane.b32.xlu1 %v3945_v52, %s3839_s26  ;;  %360 = vrot.lane.b32.xlu0 %v3947_v53, %s3839_s26  ;;  %v268_v56 = vsel %vm214_vm2, %v263_v55, 0  ;;  %v3599_v61 = vunpack.i.h.bf16 %v3597_v54  ;;  %v3598_v63 = vunpack.i.l.bf16 %v3597_v54 }
 0x293   :  { %3288 = vmatpush3.bf16.xpose.msra.mxu0 %v268_v56 }
 0x294   :  { %3299 = vmatprep.subr.bf16.mxu0 %v3834_v15  ;;  %v3968_v2 = vpack.c.bf16 %v3599_v61, %v3599_v61  ;;  %v3972_v3 = vpack.c.bf16 %v3598_v63, %v3598_v63 }
 0x295   :  { %v213_v59 = vpop.permute.xlu1 %212 }
 0x296   :  { %v219_v60 = vsel %vm214_vm2, %v213_v59, 0  ;;  %409 = vrot.lane.b32.xlu0 %v3954_v58, %s3839_s26  ;;  %3601 = vrot.lane.b32.xlu1 %v3600_v44, %s3837_s24 }
 0x297   :  { %3282 = vmatpush3.bf16.xpose.msra.mxu1 %v219_v60 }
 0x298   :  { %3293 = vmatprep.subr.bf16.mxu1 %v3834_v15 }
 0x29a   :  { %3606 = vrot.lane.b32.xlu0 %v3600_v44, %s3836_s23  ;;  %458 = vrot.lane.b32.xlu1 %v3961_v62, %s3839_s26 }
 0x29b   :  { %3290 = vmatmul.mubr.msk.bf16.vlgmr.msra.gmra.mrb[0].mxu0 %vm214_vm2, %v176_v0 }
 0x29c   :  { %3301 = vmatprep.mubr.msk.bf16.mxu0 %vm3835_vm1, %v3834_v15 }
 0x29e   :  { %3284 = vmatmul.mubr.msk.bf16.vlgmr.msra.gmra.mrb[4].mxu1 %vm214_vm2, %v175_v1  ;;  %556 = vrot.lane.b32.xlu0 %v3968_v2, %s3839_s26 }
 0x29f   :  { %507 = vrot.lane.b32.xlu1 %v3972_v3, %s3839_s26  ;;  %3295 = vmatprep.mubr.msk.bf16.mxu1 %vm3835_vm1, %v3834_v15 }
 0x2a3   :  { %3611 = vrot.lane.b32.xlu1 %v3600_v44, %s3838_s25 }
 0x304   :  { %v312_v4 = vpop.permute.xlu1 %311  ;;  %v361_v5 = vpop.permute.xlu0 %360 }
 0x305   :  { %v317_v6 = vsel %vm214_vm2, %v312_v4, 0  ;;  %v366_v7 = vsel %vm214_vm2, %v361_v5, 0 }
 0x306   :  { %3294 = vmatpush3.bf16.xpose.msra.mxu1 %v317_v6  ;;  %3300 = vmatpush3.bf16.xpose.msra.mxu0 %v366_v7 }
 0x307   :  { %3305 = vmatprep.subr.bf16.mxu1 %v3834_v15  ;;  %3311 = vmatprep.subr.bf16.mxu0 %v3834_v15 }
 0x308   :  { %v410_v8 = vpop.permute.xlu0 %409  ;;  %v3602_v9 = vpop.permute.xlu1 %3601 }
 0x309   :  { %v3604_v10 = vunpack.i.h.bf16 %v3602_v9  ;;  %v3603_v11 = vunpack.i.l.bf16 %v3602_v9  ;;  %v415_v17 = vsel %vm214_vm2, %v410_v8, 0 }
 0x30b   :  { %v178_v12 = vpack.c.bf16 %v3604_v10, %v3604_v10  ;;  %v177_v13 = vpack.c.bf16 %v3603_v11, %v3603_v11 }
 0x30c   :  { %v3607_v14 = vpop.permute.xlu0 %3606  ;;  %v459_v16 = vpop.permute.xlu1 %458 }
 0x30d   :  { %v464_v18 = vsel %vm214_vm2, %v459_v16, 0  ;;  %3296 = vmatmul.mubr.msk.bf16.vlgmr.msra.gmra.mrb[8].mxu1 %vm214_vm2, %v177_v13  ;;  %3302 = vmatmul.mubr.msk.bf16.vlgmr.msra.gmra.mrb[4].mxu0 %vm214_vm2, %v178_v12  ;;  %v3609_v19 = vunpack.i.h.bf16 %v3607_v14  ;;  %v3608_v20 = vunpack.i.l.bf16 %v3607_v14 }
 0x30e   :  { %3306 = vmatpush3.bf16.xpose.msra.mxu1 %v415_v17  ;;  %3312 = vmatpush3.bf16.xpose.msra.mxu0 %v464_v18 }
 0x30f   :  { %3307 = vmatprep.mubr.msk.bf16.mxu1 %vm3835_vm1, %v3834_v15  ;;  %3313 = vmatprep.mubr.msk.bf16.mxu0 %vm3835_vm1, %v3834_v15  ;;  %v180_v23 = vpack.c.bf16 %v3609_v19, %v3609_v19  ;;  %v179_v24 = vpack.c.bf16 %v3608_v20, %v3608_v20 }
 0x310   :  { %3317 = vmatprep.subr.bf16.mxu1 %v3834_v15  ;;  %3323 = vmatprep.subr.bf16.mxu0 %v3834_v15  ;;  %v557_v22 = vpop.permute.xlu0 %556 }
 0x311   :  { %v508_v21 = vpop.permute.xlu1 %507  ;;  %v562_v25 = vsel %vm214_vm2, %v557_v22, 0 }
 0x312   :  { %v513_v26 = vsel %vm214_vm2, %v508_v21, 0 }
 0x315   :  { %v3612_v27 = vpop.permute.xlu1 %3611  ;;  %3308 = vmatmul.mubr.msk.bf16.vlgmr.msra.gmra.mrb[12].mxu1 %vm214_vm2, %v179_v24  ;;  %3314 = vmatmul.mubr.msk.bf16.vlgmr.msra.gmra.mrb[8].mxu0 %vm214_vm2, %v180_v23 }
 0x316   :  { %3318 = vmatpush3.bf16.xpose.msra.mxu1 %v513_v26  ;;  %3324 = vmatpush3.bf16.xpose.msra.mxu0 %v562_v25  ;;  %v3614_v28 = vunpack.i.h.bf16 %v3612_v27  ;;  %v3613_v29 = vunpack.i.l.bf16 %v3612_v27 }
 0x317   :  { %3319 = vmatprep.mubr.msk.bf16.mxu1 %vm3835_vm1, %v3834_v15  ;;  %3325 = vmatprep.mubr.msk.bf16.mxu0 %vm3835_vm1, %v3834_v15 }
 0x318   :  { %3335 = vmatprep.subr.bf16.mxu0 %v3834_v15  ;;  %3329 = vmatprep.subr.bf16.mxu1 %v3834_v15  ;;  %v182_v30 = vpack.c.bf16 %v3614_v28, %v3614_v28  ;;  %v181_v31 = vpack.c.bf16 %v3613_v29, %v3613_v29 }
 0x31d   :  { %3320 = vmatmul.mubr.msk.bf16.vlgmr.msra.gmra.mrb[16].mxu1 %vm214_vm2, %v181_v31  ;;  %3326 = vmatmul.mubr.msk.bf16.vlgmr.msra.gmra.mrb[12].mxu0 %vm214_vm2, %v182_v30 }
 0x31e   :  { %3331 = vmatprep.mubr.msk.bf16.mxu1 %vm3835_vm1, %v3834_v15  ;;  %3337 = vmatprep.mubr.msk.bf16.mxu0 %vm3835_vm1, %v3834_v15 }
 0x36e   :  { %v304_v36 = vpop.f32.mrb[0].mxu0 }
 0x36f   :  { %v4024_v37 = vsel %vm4018_vm3, %v304_v36, -1e+09  ;;  %v3291_v38 = vpop.f32.mrb[1].mxu0 }
 0x370   :  { %v307_v39 = vpop.f32.mrb[2].mxu0  ;;  %v617_v40 = vsel %vm214_vm2, %v4024_v37, -inf }
 0x371   :  { %618 = vmax.xlane.f32.xlu1 %v617_v40  ;;  %v3292_v41 = vpop.f32.mrb[3].mxu0  ;;  %v255_v42 = vpop.f32.mrb[4].mxu1 }
 0x372   :  { %v606_v43 = vsel %vm4018_vm3, %v255_v42, -1e+09  ;;  %v3285_v44 = vpop.f32.mrb[5].mxu1 }
 0x373   :  { %v258_v47 = vpop.f32.mrb[6].mxu1  ;;  %v614_v48 = vsel %vm214_vm2, %v606_v43, -inf }
 0x374   :  { %615 = vmax.xlane.f32.xlu0 %v614_v48  ;;  %v3286_v49 = vpop.f32.mrb[7].mxu1 }
 0x3e0   :  { %v353_v50 = vpop.f32.mrb[8].mxu1  ;;  %v402_v51 = vpop.f32.mrb[4].mxu0 }
 0x3e1   :  { %v608_v54 = vsel %vm4018_vm3, %v353_v50, -1e+09  ;;  %v3297_v55 = vpop.f32.mrb[9].mxu1  ;;  %v3303_v56 = vpop.f32.mrb[5].mxu0  ;;  %v609_v61 = vsel %vm4018_vm3, %v402_v51, -1e+09 }
 0x3e2   :  { %v356_v57 = vpop.f32.mrb[10].mxu1  ;;  %v405_v59 = vpop.f32.mrb[6].mxu0  ;;  %v620_v60 = vsel %vm214_vm2, %v608_v54, -inf  ;;  %v623_v1 = vsel %vm214_vm2, %v609_v61, -inf }
 0x3e3   :  { %v3304_v63 = vpop.f32.mrb[7].mxu0  ;;  %621 = vmax.xlane.f32.xlu0 %v620_v60  ;;  %v3298_v0 = vpop.f32.mrb[11].mxu1 }
 0x3e7   :  { %624 = vmax.xlane.f32.xlu0 %v623_v1 }
 0x3e8   :  { %v451_v4 = vpop.f32.mrb[12].mxu1  ;;  %v500_v5 = vpop.f32.mrb[8].mxu0 }
 0x3e9   :  { %v4039_v6 = vsel %vm4018_vm3, %v451_v4, -1e+09  ;;  %v611_v7 = vsel %vm4018_vm3, %v500_v5, -1e+09  ;;  %v3309_v8 = vpop.f32.mrb[13].mxu1  ;;  %v3315_v9 = vpop.f32.mrb[9].mxu0 }
 0x3ea   :  { %v454_v10 = vpop.f32.mrb[14].mxu1  ;;  %v503_v11 = vpop.f32.mrb[10].mxu0  ;;  %v629_v12 = vsel %vm214_vm2, %v611_v7, -inf  ;;  %v626_v13 = vsel %vm214_vm2, %v4039_v6, -inf }
 0x3eb   :  { %630 = vmax.xlane.f32.xlu1 %v629_v12  ;;  %v3316_v14 = vpop.f32.mrb[11].mxu0  ;;  %627 = vmax.xlane.f32.xlu0 %v626_v13  ;;  %v3310_v16 = vpop.f32.mrb[15].mxu1 }
 0x3f0   :  { %v549_v17 = vpop.f32.mrb[16].mxu1  ;;  %v598_v18 = vpop.f32.mrb[12].mxu0 }
 0x3f1   :  { %v4048_v19 = vsel %vm4018_vm3, %v549_v17, -1e+09  ;;  %v3321_v20 = vpop.f32.mrb[17].mxu1  ;;  %v3327_v21 = vpop.f32.mrb[13].mxu0  ;;  %v613_v30 = vsel %vm4018_vm3, %v598_v18, -1e+09 }
 0x3f2   :  { %v552_v22 = vpop.f32.mrb[18].mxu1  ;;  %v601_v23 = vpop.f32.mrb[14].mxu0  ;;  %v632_v24 = vsel %vm214_vm2, %v4048_v19, -inf  ;;  %v635_v31 = vsel %vm214_vm2, %v613_v30, -inf }
 0x3f3   :  { %v3328_v25 = vpop.f32.mrb[15].mxu0  ;;  %633 = vmax.xlane.f32.xlu0 %v632_v24  ;;  %v3322_v26 = vpop.f32.mrb[19].mxu1 }
 0x3fc   :  { %759 = vrot.lane.b32.xlu1 %v3936_v45, %s3840_s27 }
 0x400   :  { %807 = vrot.lane.b32.xlu1 %v3945_v52, %s3840_s27 }
 0x401   :  { %v616_v27 = vpop.xlane.xlu0 %615 }
 0x402   :  { %v638_v28 = vsub.f32 %v606_v43, %v616_v27 }
 0x404   :  { %v646_v29 = vmul.f32 1.442695, %v638_v28 }
 0x406   :  { %3710 = vpow2.f32 %v646_v29 }
 0x409   :  { %710 = vrot.lane.b32.xlu0 %v3941_v46, %s3840_s27  ;;  %v619_v46 = vpop.xlane.xlu1 %618 }
 0x40a   :  { %v639_v52 = vsub.f32 %v4024_v37, %v619_v46 }
 0x40c   :  { %v648_v36 = vmul.f32 1.442695, %v639_v52 }
 0x40e   :  { %3712 = vpow2.f32 %v648_v36 }
 0x410   :  { %v4061_v32 = vpop.eup %3710 }
 0x411   :  { %v662_v45 = vsel %vm214_vm2, %v4061_v32, 0.0 }
 0x418   :  { %v4068_v38 = vpop.eup %3712 }
 0x419   :  { %v665_v39 = vsel %vm214_vm2, %v4068_v38, 0.0 }
 0x424   :  { %636 = vmax.xlane.f32.xlu1 %v635_v31 }
 0x428   :  { %663 = vadd.xlane.f32.xlu0 %v662_v45 }
 0x435   :  { %855 = vrot.lane.b32.xlu1 %v3947_v53, %s3840_s27 }
 0x459   :  { %666 = vadd.xlane.f32.xlu1 %v665_v39 }
 0x46a   :  { %951 = vrot.lane.b32.xlu1 %v3961_v62, %s3840_s27 }
 0x470   :  { %v622_v40 = vpop.xlane.xlu0 %621 }
 0x471   :  { %v640_v41 = vsub.f32 %v608_v54, %v622_v40 }
 0x473   :  { %v650_v42 = vmul.f32 1.442695, %v640_v41 }
 0x474   :  { %v625_v43 = vpop.xlane.xlu0 %624 }
 0x475   :  { %3714 = vpow2.f32 %v650_v42  ;;  %v641_v53 = vsub.f32 %v609_v61, %v625_v43 }
 0x477   :  { %v652_v37 = vmul.f32 1.442695, %v641_v53 }
 0x478   :  { %v631_v44 = vpop.xlane.xlu1 %630  ;;  %v628_v48 = vpop.xlane.xlu0 %627 }
 0x479   :  { %v643_v47 = vsub.f32 %v611_v7, %v631_v44  ;;  %3716 = vpow2.f32 %v652_v37  ;;  %v642_v0 = vsub.f32 %v4039_v6, %v628_v48 }
 0x47b   :  { %v656_v62 = vmul.f32 1.442695, %v643_v47  ;;  %v654_v1 = vmul.f32 1.442695, %v642_v0 }
 0x47c   :  { %v760_v49 = vpop.permute.xlu1 %759 }
 0x47d   :  { %v765_v50 = vsel %vm715_vm4, %v760_v49, 0  ;;  %3718 = vpow2.f32 %v656_v62 }
 0x47e   :  { %3336 = vmatpush3.bf16.msra.mxu0 %v765_v50  ;;  %3720 = vpow2.f32 %v654_v1 }
 0x47f   :  { %v4075_v51 = vpop.eup %3714  ;;  %3347 = vmatprep.subr.bf16.mxu0 %v3834_v15 }
 0x480   :  { %v634_v54 = vpop.xlane.xlu0 %633  ;;  %v668_v55 = vsel %vm214_vm2, %v4075_v51, 0.0  ;;  %v808_v7 = vpop.permute.xlu1 %807 }
 0x481   :  { %669 = vadd.xlane.f32.xlu0 %v668_v55  ;;  %v644_v4 = vsub.f32 %v4048_v19, %v634_v54  ;;  %v813_v20 = vsel %vm715_vm4, %v808_v7, 0 }
 0x483   :  { %v4082_v59 = vpop.eup %3716  ;;  %v658_v5 = vmul.f32 1.442695, %v644_v4 }
 0x484   :  { %v711_v56 = vpop.permute.xlu0 %710  ;;  %v671_v60 = vsel %vm214_vm2, %v4082_v59, 0.0 }
 0x485   :  { %v717_v57 = vsel %vm715_vm4, %v711_v56, 0  ;;  %3722 = vpow2.f32 %v658_v5 }
 0x486   :  { %3330 = vmatpush3.bf16.msra.mxu1 %v717_v57 }
 0x487   :  { %3341 = vmatprep.subr.bf16.mxu1 %v3834_v15  ;;  %v4086_v61 = vpop.eup %3718 }
 0x488   :  { %v677_v63 = vsel %vm214_vm2, %v4086_v61, 0.0  ;;  %v4094_v9 = vpop.eup %3720 }
 0x489   :  { %v674_v13 = vsel %vm214_vm2, %v4094_v9, 0.0 }
 0x48e   :  { %672 = vadd.xlane.f32.xlu1 %v671_v60 }
 0x48f   :  { %v4098_v14 = vpop.eup %3722 }
 0x492   :  { %678 = vadd.xlane.f32.xlu1 %v677_v63 }
 0x497   :  { %903 = vrot.lane.b32.xlu0 %v3954_v58, %s3840_s27  ;;  %v680_v58 = vsel %vm214_vm2, %v4098_v14, 0.0 }
 0x4b1   :  { %v637_v8 = vpop.xlane.xlu1 %636 }
 0x4b2   :  { %v645_v10 = vsub.f32 %v613_v30, %v637_v8 }
 0x4b4   :  { %v660_v11 = vmul.f32 1.442695, %v645_v10 }
 0x4b5   :  { %v664_v12 = vpop.xlane.xlu0 %663  ;;  %v856_v21 = vpop.permute.xlu1 %855 }
 0x4b6   :  { %3724 = vpow2.f32 %v660_v11  ;;  %675 = vadd.xlane.f32.xlu0 %v674_v13  ;;  %v861_v26 = vsel %vm715_vm4, %v856_v21, 0 }
 0x4b7   :  { %3726 = vrcp.f32 %v664_v12 }
 0x4ba   :  { %681 = vadd.xlane.f32.xlu0 %v680_v58 }
 0x4c0   :  { %v4102_v6 = vpop.eup %3724 }
 0x4c1   :  { %v3727_v16 = vpop.eup %3726  ;;  %v683_v17 = vsel %vm214_vm2, %v4102_v6, 0.0 }
 0x4c2   :  { %v694_v18 = vmul.f32 %v3727_v16, %v4061_v32  ;;  %684 = vadd.xlane.f32.xlu1 %v683_v17 }
 0x4c4   :  { %v702_v19 = vpack.c.bf16 %v694_v18, %v694_v18 }
 0x4c6   :  { %3332 = vmatmul.mubr.msk.bf16.vlgmr.msra.gmra.mrb[20].mxu1 %vm214_vm2, %v702_v19 }
 0x4c7   :  { %3342 = vmatpush3.bf16.msra.mxu1 %v813_v20  ;;  %3343 = vmatprep.mubr.msk.bf16.mxu1 %vm3835_vm1, %v3834_v15  ;;  %v3678_v20 = vld [vmem:[%s4644_s4] sm:$0xff]  }
 0x4c8   :  { %3353 = vmatprep.subr.bf16.mxu1 %v3834_v15 }
 0x4d0   :  { %999 = vrot.lane.b32.xlu0 %v3972_v3, %s3840_s27 }
 0x4d3   :  { %1047 = vrot.lane.b32.xlu1 %v3968_v2, %s3840_s27 }
 0x4e6   :  { %v667_v22 = vpop.xlane.xlu1 %666 }
 0x4e7   :  { %3728 = vrcp.f32 %v667_v22 }
 0x4ea   :  { %v952_v2 = vpop.permute.xlu1 %951 }
 0x4eb   :  { %v957_v39 = vsel %vm715_vm4, %v952_v2, 0 }
 0x4f1   :  { %v3729_v23 = vpop.eup %3728 }
 0x4f2   :  { %v695_v24 = vmul.f32 %v3729_v23, %v4068_v38 }
 0x4f4   :  { %v703_v25 = vpack.c.bf16 %v695_v24, %v695_v24 }
 0x4f6   :  { %3338 = vmatmul.mubr.msk.bf16.vlgmr.msra.gmra.mrb[16].mxu0 %vm214_vm2, %v703_v25 }
 0x4f7   :  { %3348 = vmatpush3.bf16.msra.mxu0 %v861_v26  ;;  %3349 = vmatprep.mubr.msk.bf16.mxu0 %vm3835_vm1, %v3834_v15  ;;  %v3679_v26 = vld [vmem:[%s4644_s4 + $0x8] sm:$0xff]  }
 0x4f8   :  { %3359 = vmatprep.subr.bf16.mxu0 %v3834_v15 }
 0x50e   :  { %v670_v3 = vpop.xlane.xlu0 %669 }
 0x50f   :  { %3730 = vrcp.f32 %v670_v3 }
 0x512   :  { %v904_v29 = vpop.permute.xlu0 %903 }
 0x513   :  { %v909_v32 = vsel %vm715_vm4, %v904_v29, 0 }
 0x519   :  { %v3731_v27 = vpop.eup %3730 }
 0x51a   :  { %v696_v28 = vmul.f32 %v3731_v27, %v4075_v51 }
 0x51b   :  { %v673_v30 = vpop.xlane.xlu1 %672 }
 0x51c   :  { %3732 = vrcp.f32 %v673_v30  ;;  %v704_v31 = vpack.c.bf16 %v696_v28, %v696_v28 }
 0x51e   :  { %3344 = vmatmul.mubr.msk.bf16.vlgmr.msra.gmra.mrb[24].mxu1 %vm214_vm2, %v704_v31 }
 0x51f   :  { %3354 = vmatpush3.bf16.msra.mxu1 %v909_v32  ;;  %v679_v45 = vpop.xlane.xlu1 %678  ;;  %3355 = vmatprep.mubr.msk.bf16.mxu1 %vm3835_vm1, %v3834_v15 }
 0x520   :  { %3734 = vrcp.f32 %v679_v45  ;;  %3365 = vmatprep.subr.bf16.mxu1 %v3834_v15 }
 0x526   :  { %v3733_v46 = vpop.eup %3732 }
 0x527   :  { %v697_v52 = vmul.f32 %v3733_v46, %v4082_v59 }
 0x529   :  { %v705_v36 = vpack.c.bf16 %v697_v52, %v697_v52 }
 0x52a   :  { %v3735_v38 = vpop.eup %3734 }
 0x52b   :  { %3350 = vmatmul.mubr.msk.bf16.vlgmr.msra.gmra.mrb[20].mxu0 %vm214_vm2, %v705_v36  ;;  %v699_v40 = vmul.f32 %v3735_v38, %v4086_v61 }
 0x52c   :  { %3360 = vmatpush3.bf16.msra.mxu0 %v957_v39  ;;  %3361 = vmatprep.mubr.msk.bf16.mxu0 %vm3835_vm1, %v3834_v15 }
 0x52d   :  { %3371 = vmatprep.subr.bf16.mxu0 %v3834_v15  ;;  %v707_v41 = vpack.c.bf16 %v699_v40, %v699_v40 }
 0x533   :  { %3362 = vmatmul.mubr.msk.bf16.vlgmr.msra.gmra.mrb[24].mxu0 %vm214_vm2, %v707_v41 }
 0x534   :  { %3373 = vmatprep.mubr.msk.bf16.mxu0 %vm3835_vm1, %v3834_v15 }
 0x543   :  { %v676_v42 = vpop.xlane.xlu0 %675 }
 0x544   :  { %3736 = vrcp.f32 %v676_v42 }
 0x547   :  { %v682_v43 = vpop.xlane.xlu0 %681 }
 0x548   :  { %3738 = vrcp.f32 %v682_v43 }
 0x54b   :  { %v1000_v47 = vpop.permute.xlu0 %999 }
 0x54c   :  { %v1005_v50 = vsel %vm715_vm4, %v1000_v47, 0 }
 0x54e   :  { %v3737_v53 = vpop.eup %3736 }
 0x54f   :  { %v698_v44 = vmul.f32 %v3737_v53, %v4094_v9  ;;  %v685_v37 = vpop.xlane.xlu1 %684 }
 0x550   :  { %3740 = vrcp.f32 %v685_v37 }
 0x551   :  { %v706_v48 = vpack.c.bf16 %v698_v44, %v698_v44 }
 0x552   :  { %v3739_v49 = vpop.eup %3738 }
 0x553   :  { %v1048_v51 = vpop.permute.xlu1 %1047  ;;  %3356 = vmatmul.mubr.msk.bf16.vlgmr.msra.gmra.mrb[28].mxu1 %vm214_vm2, %v706_v48  ;;  %v700_v54 = vmul.f32 %v3739_v49, %v4098_v14 }
 0x554   :  { %v1053_v62 = vsel %vm715_vm4, %v1048_v51, 0  ;;  %3366 = vmatpush3.bf16.msra.mxu1 %v1005_v50  ;;  %3367 = vmatprep.mubr.msk.bf16.mxu1 %vm3835_vm1, %v3834_v15  ;;  %v3071_v51 = vld [vmem:[%s4642_s2 + $0x3] ss:$0 sm:$0xff] }
 0x555   :  { %3372 = vmatpush3.bf16.msra.mxu0 %v1053_v62  ;;  %3377 = vmatprep.subr.bf16.mxu1 %v3834_v15  ;;  %v708_v55 = vpack.c.bf16 %v700_v54, %v700_v54  ;;  %v3806_v54 = vld [vmem:[%s4641_s1] sm:$0xff] }
 0x556   :  { %3385 = vmatprep.subr.bf16.mxu0 %v3834_v15 }
 0x55a   :  { %v3741_v56 = vpop.eup %3740 }
 0x55b   :  { %v701_v57 = vmul.f32 %v3741_v56, %v4102_v6  ;;  %3368 = vmatmul.mubr.msk.bf16.vlgmr.msra.gmra.mrb[32].mxu1 %vm214_vm2, %v708_v55 }
 0x55c   :  { %3381 = vmatprep.mubr.msk.bf16.mxu1 %vm3835_vm1, %v3834_v15  ;;  %3378 = vmatpush3.bf16.msra.mxu1 %v3678_v20 }
 0x55d   :  { %v709_v59 = vpack.c.bf16 %v701_v57, %v701_v57  ;;  %3379 = vmatprep.subr.bf16.mxu1 %v3834_v15 }
 0x55f   :  { %3374 = vmatmul.mubr.msk.bf16.vlgmr.msra.gmra.mrb[28].mxu0 %vm214_vm2, %v709_v59 }
 0x560   :  { %3389 = vmatprep.mubr.msk.bf16.mxu0 %vm3835_vm1, %v3834_v15  ;;  %3380 = vmatpush3.bf16.msra.mxu1 %v3679_v26 }
 0x561   :  { %3393 = vmatprep.subr.bf16.mxu1 %v3834_v15 }
 0x599   :  { %v753_v60 = vpop.f32.mrb[20].mxu1 }
 0x59a   :  { %v3333_v61 = vpop.f32.mrb[21].mxu1 }
 0x59b   :  { %v756_v63 = vpop.f32.mrb[22].mxu1 }
 0x59c   :  { %v3334_v0 = vpop.f32.mrb[23].mxu1 }
 0x5c9   :  { %v801_v1 = vpop.f32.mrb[16].mxu0 }
 0x5ca   :  { %v3339_v4 = vpop.f32.mrb[17].mxu0 }
 0x5cb   :  { %v804_v5 = vpop.f32.mrb[18].mxu0 }
 0x5cc   :  { %v3340_v7 = vpop.f32.mrb[19].mxu0 }
 0x5f1   :  { %v849_v8 = vpop.f32.mrb[24].mxu1 }
 0x5f2   :  { %v3345_v9 = vpop.f32.mrb[25].mxu1 }
 0x5f3   :  { %v852_v10 = vpop.f32.mrb[26].mxu1 }
 0x5f4   :  { %v3346_v11 = vpop.f32.mrb[27].mxu1 }
 0x5fe   :  { %v897_v12 = vpop.f32.mrb[20].mxu0 }
 0x5ff   :  { %v3615_v13 = vpack.i.bf16 %v897_v12, %v849_v8  ;;  %v3351_v14 = vpop.f32.mrb[21].mxu0 }
 0x600   :  { %v900_v58 = vpop.f32.mrb[22].mxu0 }
 0x601   :  { %v3352_v6 = vpop.f32.mrb[23].mxu0  ;;  %3616 = vrot.lane.b32.xlu0 %v3615_v13, %s3841_s28 }
 0x602   :  { %v3680_v6 = vld [vmem:[%s4645_s5] sm:$0xff]  }
 0x603   :  { %3386 = vmatpush3.bf16.msra.mxu0 %v3680_v6 }
 0x604   :  { %3387 = vmatprep.subr.bf16.mxu0 %v3834_v15 }
 0x606   :  { %v993_v16 = vpop.f32.mrb[24].mxu0 }
 0x607   :  { %v3363_v17 = vpop.f32.mrb[25].mxu0 }
 0x608   :  { %v996_v18 = vpop.f32.mrb[26].mxu0 }
 0x609   :  { %v3364_v19 = vpop.f32.mrb[27].mxu0 }
 0x626   :  { %v945_v21 = vpop.f32.mrb[28].mxu1 }
 0x627   :  { %v3620_v22 = vpack.i.bf16 %v993_v16, %v945_v21  ;;  %v3357_v23 = vpop.f32.mrb[29].mxu1  ;;  %v3681_v16 = vld [vmem:[%s4645_s5 + $0x8] sm:$0xff]  }
 0x628   :  { %v948_v24 = vpop.f32.mrb[30].mxu1  ;;  %3388 = vmatpush3.bf16.msra.mxu0 %v3681_v16 }
 0x629   :  { %3621 = vrot.lane.b32.xlu1 %v3620_v22, %s3842_s10  ;;  %v3358_v25 = vpop.f32.mrb[31].mxu1  ;;  %3413 = vmatprep.subr.bf16.mxu0 %v3834_v15 }
 0x62a   :  { %v3072_v25 = vld [vmem:[%s4642_s2 + $0x4] ss:$0 sm:$0xff] }
 0x62e   :  { %v1041_v3 = vpop.f32.mrb[32].mxu1 }
 0x62f   :  { %v3369_v2 = vpop.f32.mrb[33].mxu1 }
 0x630   :  { %v1044_v27 = vpop.f32.mrb[34].mxu1 }
 0x631   :  { %v3370_v28 = vpop.f32.mrb[35].mxu1  ;;  %v3073_v27 = vld [vmem:[%s4642_s2 + $0x5] ss:$0 sm:$0xff] }
 0x632   :  { %v1089_v29 = vpop.f32.mrb[28].mxu0 }
 0x633   :  { %v3625_v30 = vpack.i.bf16 %v1089_v29, %v1041_v3  ;;  %v3375_v31 = vpop.f32.mrb[29].mxu0 }
 0x634   :  { %v1092_v32 = vpop.f32.mrb[30].mxu0 }
 0x635   :  { %v3376_v45 = vpop.f32.mrb[31].mxu0  ;;  %3626 = vrot.lane.b32.xlu0 %v3625_v30, %s3843_s13  ;;  %v3682_v32 = vld [vmem:[%s4646_s6] sm:$0xff]  }
 0x636   :  { %v3683_v45 = vld [vmem:[%s4646_s6 + $0x8] sm:$0xff]  }
 0x673   :  { %v3617_v46 = vpop.permute.xlu0 %3616 }
 0x674   :  { %v3619_v36 = vunpack.i.h.bf16 %v3617_v46  ;;  %v3618_v38 = vunpack.i.l.bf16 %v3617_v46  ;;  %v3684_v46 = vld [vmem:[%s4646_s6 + $0x10] sm:$0xff]  }
 0x676   :  { %v1120_v42 = vsel %vm214_vm2, %v801_v1, %v3619_v36  ;;  %v1119_v43 = vsel %vm214_vm2, %v753_v60, %v3618_v38  ;;  %v3807_v60 = vld [vmem:[%s4641_s1 + $0x8] sm:$0xff]  ;;  %v3686_v36 = vld [vmem:[%s4646_s6 + $0x20] sm:$0xff]  }
 0x677   :  { %v3687_v38 = vld [vmem:[%s4646_s6 + $0x28] sm:$0xff]  }
 0x69b   :  { %v3622_v52 = vpop.permute.xlu1 %3621 }
 0x69c   :  { %v3624_v39 = vunpack.i.h.bf16 %v3622_v52  ;;  %v3623_v40 = vunpack.i.l.bf16 %v3622_v52  ;;  %v3685_v52 = vld [vmem:[%s4646_s6 + $0x18] sm:$0xff]  }
 0x69e   :  { %v1123_v37 = vsel %vm1121_vm5, %v1120_v42, %v3624_v39  ;;  %v1122_v47 = vsel %vm1121_vm5, %v1119_v43, %v3623_v40  ;;  %v3688_v39 = vld [vmem:[%s4646_s6 + $0x30] sm:$0xff]   ;;  %v3689_v40 = vld [vmem:[%s4646_s6 + $0x38] sm:$0xff]  }
 0x6a7   :  { %v3627_v41 = vpop.permute.xlu0 %3626 }
 0x6a8   :  { %v3629_v53 = vunpack.i.h.bf16 %v3627_v41  ;;  %v3628_v44 = vunpack.i.l.bf16 %v3627_v41  ;;  %v3074_v41 = vld [vmem:[%s4642_s2 + $0x6] ss:$0 sm:$0xff] }
 0x6aa   :  { %v1126_v48 = vsel %vm1124_vm6, %v1123_v37, %v3629_v53  ;;  %v1125_v49 = vsel %vm1124_vm6, %v1122_v47, %v3628_v44 }
 0x6ab   :  { %v1127_v50 = vpack.c.bf16 %v1126_v48, %v1125_v49 }
 0x6ad   :  { %3382 = vmatmul.mubr.msk.bf16.vlgmr.msra.gmra.mrb[36].mxu1 %vm48_vm0, %v1127_v50 }
 0x6ae   :  { %3409 = vmatprep.mubr.msk.bf16.mxu1 %vm3835_vm1, %v3834_v15  ;;  %3394 = vmatpush3.bf16.msra.mxu1 %v3682_v32 }
 0x6af   :  { %3395 = vmatprep.subr.bf16.mxu1 %v3834_v15 }
 0x6b2   :  { %3396 = vmatpush3.bf16.msra.mxu1 %v3683_v45 }
 0x6b3   :  { %3397 = vmatprep.subr.bf16.mxu1 %v3834_v15 }
 0x6b6   :  { %3398 = vmatpush3.bf16.msra.mxu1 %v3684_v46 }
 0x6b7   :  { %3399 = vmatprep.subr.bf16.mxu1 %v3834_v15 }
 0x6ba   :  { %3400 = vmatpush3.bf16.msra.mxu1 %v3685_v52  ;;  %v3090_v52 = vld [vmem:[%s4642_s2 + $0x9] ss:$0 sm:$0xff] }
 0x6bb   :  { %3401 = vmatprep.subr.bf16.mxu1 %v3834_v15 }
 0x6be   :  { %3402 = vmatpush3.bf16.msra.mxu1 %v3686_v36 }
 0x6bf   :  { %3403 = vmatprep.subr.bf16.mxu1 %v3834_v15 }
 0x6c2   :  { %3404 = vmatpush3.bf16.msra.mxu1 %v3687_v38 }
 0x6c3   :  { %3405 = vmatprep.subr.bf16.mxu1 %v3834_v15 }
 0x6c6   :  { %3406 = vmatpush3.bf16.msra.mxu1 %v3688_v39 }
 0x6c7   :  { %3407 = vmatprep.subr.bf16.mxu1 %v3834_v15 }
 0x6ca   :  { %3408 = vmatpush3.bf16.msra.mxu1 %v3689_v40 }
 0x6cb   :  { %3439 = vmatprep.subr.bf16.mxu1 %v3834_v15 }
 0x780   :  { %v1181_v62 = vpop.f32.mrb[36].mxu1 }
 0x781   :  { %v1188_v55 = vadd.f32 %v3806_v54, %v1181_v62  ;;  %v3383_v56 = vpop.f32.mrb[37].mxu1 }
 0x782   :  { %v1184_v57 = vpop.f32.mrb[38].mxu1 }
 0x783   :  { %v4180_v59 = vadd.f32 %v3071_v51, %v1188_v55  ;;  %v1189_v61 = vadd.f32 %v3807_v60, %v1184_v57  ;;  %v3384_v63 = vpop.f32.mrb[39].mxu1 }
 0x785   :  { %v4185_v0 = vadd.f32 %v3071_v51, %v1189_v61  ;;  %v1196_v1 = vsel %vm48_vm0, %v4180_v59, 0.0 }
 0x786   :  { %1197 = vadd.xlane.f32.xlu1 %v1196_v1 }
 0x787   :  { %v1199_v4 = vsel %vm48_vm0, %v4185_v0, 0.0 }
 0x788   :  { %1200 = vadd.xlane.f32.xlu0 %v1199_v4  ;;  %v3080_v4 = vld [vmem:[%s4642_s2 + $0x7] ss:$0 sm:$0xff] }
 0x813   :  { %v1198_v5 = vpop.xlane.xlu1 %1197 }
 0x814   :  { %v1202_v7 = vmul.f32 0.03125, %v1198_v5 }
 0x815   :  { %v1201_v8 = vpop.xlane.xlu0 %1200 }
 0x816   :  { %v1204_v9 = vsub.f32 %v4180_v59, %v1202_v7  ;;  %v1203_v10 = vmul.f32 0.03125, %v1201_v8 }
 0x818   :  { %v1205_v11 = vsub.f32 %v4185_v0, %v1203_v10  ;;  %v1206_v12 = vmul.f32 %v1204_v9, %v1204_v9 }
 0x81a   :  { %v1208_v13 = vsel %vm48_vm0, %v1206_v12, 0.0  ;;  %v1207_v14 = vmul.f32 %v1205_v11, %v1205_v11 }
 0x81b   :  { %1209 = vadd.xlane.f32.xlu0 %v1208_v13 }
 0x81c   :  { %v1211_v58 = vsel %vm48_vm0, %v1207_v14, 0.0 }
 0x81f   :  { %1212 = vadd.xlane.f32.xlu0 %v1211_v58 }
 0x8a8   :  { %v1210_v17 = vpop.xlane.xlu0 %1209 }
 0x8a9   :  { %v1214_v18 = vmul.f32 0.03125, %v1210_v17 }
 0x8ab   :  { %v1216_v19 = vadd.f32 1e-05, %v1214_v18 }
 0x8ac   :  { %v1213_v20 = vpop.xlane.xlu0 %1212 }
 0x8ad   :  { %3742 = vrsqrt.f32 %v1216_v19  ;;  %v1215_v21 = vmul.f32 0.03125, %v1213_v20 }
 0x8af   :  { %v1217_v22 = vadd.f32 1e-05, %v1215_v21 }
 0x8b1   :  { %3744 = vrsqrt.f32 %v1217_v22 }
 0x8b7   :  { %v3743_v23 = vpop.eup %3742 }
 0x8b8   :  { %v1220_v24 = vmul.f32 %v3743_v23, %v1204_v9  ;;  %v3690_v23 = vld [vmem:[%s4643_s3 + $0x10] sm:$0xff]  }
 0x8ba   :  { %v1226_v3 = vmul.f32 %v3072_v25, %v1220_v24  ;;  %v3691_v24 = vld [vmem:[%s4643_s3 + $0x18] sm:$0xff]  }
 0x8bb   :  { %v3745_v26 = vpop.eup %3744 }
 0x8bc   :  { %v1221_v2 = vmul.f32 %v3745_v26, %v1205_v11  ;;  %v1232_v29 = vadd.f32 %v3073_v27, %v1226_v3 }
 0x8be   :  { %v1227_v28 = vmul.f32 %v3072_v25, %v1221_v2 }
 0x8c0   :  { %v1233_v30 = vadd.f32 %v3073_v27, %v1227_v28 }
 0x8c2   :  { %v1234_v31 = vpack.c.bf16 %v1233_v30, %v1232_v29  ;;  %v3089_v30 = vld [vmem:[%s4642_s2 + $0x8] ss:$0 sm:$0xff] }
 0x8c4   :  { %3390 = vmatmul.mubr.msk.bf16.vlgmr.msra.gmra.mrb[32].mxu0 %vm48_vm0, %v1234_v31 }
 0x8c5   :  { %3417 = vmatprep.mubr.msk.bf16.mxu0 %vm3835_vm1, %v3834_v15  ;;  %3414 = vmatpush3.bf16.msra.mxu0 %v3690_v23 }
 0x8c6   :  { %3415 = vmatprep.subr.bf16.mxu0 %v3834_v15 }
 0x8c9   :  { %3416 = vmatpush3.bf16.msra.mxu0 %v3691_v24 }
 0x8ca   :  { %3421 = vmatprep.subr.bf16.mxu0 %v3834_v15 }
 0x997   :  { %v1292_v42 = vpop.f32.mrb[32].mxu0 }
 0x998   :  { %v1293_v43 = vadd.f32 %v3074_v41, %v1292_v42  ;;  %v3391_v53 = vpop.f32.mrb[33].mxu0 }
 0x999   :  { %v1295_v44 = vpop.f32.mrb[34].mxu0 }
 0x99a   :  { %v3078_v37 = vmul.f32 -1.702, %v1293_v43  ;;  %v1296_v47 = vadd.f32 %v3074_v41, %v1295_v44  ;;  %v3392_v48 = vpop.f32.mrb[35].mxu0  ;;  %v3095_v41 = vld [vmem:[%s4642_s2 + $0xa] ss:$0 sm:$0xff] }
 0x99c   :  { %v1303_v49 = vmul.f32 1.442695, %v3078_v37  ;;  %v3079_v50 = vmul.f32 -1.702, %v1296_v47 }
 0x99e   :  { %3746 = vpow2.f32 %v1303_v49  ;;  %v1305_v51 = vmul.f32 1.442695, %v3079_v50 }
 0x9a0   :  { %3748 = vpow2.f32 %v1305_v51 }
 0x9a8   :  { %v3747_v62 = vpop.eup %3746 }
 0x9a9   :  { %v1307_v54 = vadd.f32 1.0, %v3747_v62 }
 0x9aa   :  { %v3749_v55 = vpop.eup %3748 }
 0x9ab   :  { %3750 = vrcp.f32 %v1307_v54  ;;  %v1308_v56 = vadd.f32 1.0, %v3749_v55 }
 0x9ad   :  { %3752 = vrcp.f32 %v1308_v56 }
 0x9b5   :  { %v3751_v57 = vpop.eup %3750 }
 0x9b6   :  { %v1313_v61 = vmul.f32 %v3751_v57, %v1293_v43 }
 0x9b7   :  { %v3753_v60 = vpop.eup %3752 }
 0x9b8   :  { %v1314_v63 = vmul.f32 %v3753_v60, %v1296_v47 }
 0x9ba   :  { %v1315_v1 = vpack.c.bf16 %v1314_v63, %v1313_v61 }
 0x9bc   :  { %3410 = vmatmul.mubr.bf16.vlgmr.msra.gmra.mrb[40].mxu1 %v1315_v1 }
 0x9bd   :  { %3441 = vmatprep.mubr.msk.bf16.mxu1 %vm3835_vm1, %v3834_v15 }
 0xa8f   :  { %v1418_v5 = vpop.f32.mrb[40].mxu1 }
 0xa90   :  { %v1419_v7 = vadd.f32 %v3080_v4, %v1418_v5  ;;  %v3411_v8 = vpop.f32.mrb[41].mxu1 }
 0xa91   :  { %v1421_v9 = vpop.f32.mrb[42].mxu1 }
 0xa92   :  { %v4253_v10 = vadd.f32 %v1419_v7, %v4180_v59  ;;  %v1422_v11 = vadd.f32 %v3080_v4, %v1421_v9  ;;  %v3412_v12 = vpop.f32.mrb[43].mxu1 }
 0xa94   :  { %v4256_v13 = vadd.f32 %v1422_v11, %v4185_v0  ;;  %v1435_v14 = vsel %vm48_vm0, %v4253_v10, 0.0 }
 0xa95   :  { %1436 = vadd.xlane.f32.xlu1 %v1435_v14 }
 0xa96   :  { %v1438_v58 = vsel %vm48_vm0, %v4256_v13, 0.0 }
 0xa97   :  { %1439 = vadd.xlane.f32.xlu0 %v1438_v58 }
 0xb22   :  { %v1437_v6 = vpop.xlane.xlu1 %1436 }
 0xb23   :  { %v1441_v16 = vmul.f32 0.03125, %v1437_v6 }
 0xb24   :  { %v1440_v17 = vpop.xlane.xlu0 %1439 }
 0xb25   :  { %v1443_v18 = vsub.f32 %v4253_v10, %v1441_v16  ;;  %v1442_v59 = vmul.f32 0.03125, %v1440_v17 }
 0xb27   :  { %v1444_v19 = vsub.f32 %v4256_v13, %v1442_v59  ;;  %v1445_v20 = vmul.f32 %v1443_v18, %v1443_v18 }
 0xb29   :  { %v1447_v0 = vsel %vm48_vm0, %v1445_v20, 0.0  ;;  %v1446_v21 = vmul.f32 %v1444_v19, %v1444_v19 }
 0xb2a   :  { %1448 = vadd.xlane.f32.xlu1 %v1447_v0 }
 0xb2b   :  { %v1450_v22 = vsel %vm48_vm0, %v1446_v21, 0.0 }
 0xb2c   :  { %1451 = vadd.xlane.f32.xlu0 %v1450_v22 }
 0xbb7   :  { %v1449_v25 = vpop.xlane.xlu1 %1448 }
 0xbb8   :  { %v1453_v26 = vmul.f32 0.03125, %v1449_v25 }
 0xbb9   :  { %v1452_v3 = vpop.xlane.xlu0 %1451 }
 0xbba   :  { %v1455_v2 = vadd.f32 1e-05, %v1453_v26  ;;  %v1454_v27 = vmul.f32 0.03125, %v1452_v3 }
 0xbbc   :  { %3754 = vrsqrt.f32 %v1455_v2  ;;  %v1456_v28 = vadd.f32 1e-05, %v1454_v27 }
 0xbbe   :  { %3756 = vrsqrt.f32 %v1456_v28 }
 0xbc6   :  { %v3755_v29 = vpop.eup %3754 }
 0xbc7   :  { %v1459_v31 = vmul.f32 %v3755_v29, %v1443_v18 }
 0xbc8   :  { %v3757_v32 = vpop.eup %3756 }
 0xbc9   :  { %v1465_v45 = vmul.f32 %v3089_v30, %v1459_v31  ;;  %v1460_v46 = vmul.f32 %v3757_v32, %v1444_v19 }
 0xbcb   :  { %v1466_v36 = vmul.f32 %v3089_v30, %v1460_v46  ;;  %v1471_v38 = vadd.f32 %v3090_v52, %v1465_v45 }
 0xbcd   :  { %v1472_v39 = vadd.f32 %v3090_v52, %v1466_v36 }
 0xbcf   :  { %v1473_v40 = vpack.c.bf16 %v1472_v39, %v1471_v38 }
 0xbd1   :  { %3418 = vmatmul.mubr.msk.bf16.vlgmr.msra.gmra.mrb[36].mxu0 %vm48_vm0, %v1473_v40 }
 0xbd2   :  { %3423 = vmatprep.mubr.msk.bf16.mxu0 %vm3835_vm1, %v3834_v15 }
 0xca4   :  { %v1532_v42 = vpop.f32.mrb[36].mxu0 }
 0xca5   :  { %v3419_v43 = vpop.f32.mrb[37].mxu0  ;;  %v1533_v53 = vadd.f32 %v3095_v41, %v1532_v42 }
 0xca6   :  { %v1535_v44 = vpop.f32.mrb[38].mxu0 }
 0xca7   :  { %v1536_v37 = vadd.f32 %v3095_v41, %v1535_v44  ;;  %v3420_v47 = vpop.f32.mrb[39].mxu0  ;;  %v1539_v49 = vmul.f32 0.35355338, %v1533_v53  ;;  %v1589_v62 = vpack.c.bf16 %v1533_v53, %v1533_v53 }
 0xca9   :  { %v3635_v48 = vpack.i.bf16 %v1536_v37, %v1533_v53  ;;  %v1540_v50 = vmul.f32 0.35355338, %v1536_v37  ;;  %v4290_v54 = vpack.c.bf16 %v1536_v37, %v1536_v37  ;;  %v1561_v16 = vpack.c.bf16 %v1539_v49, %v1539_v49 }
 0xcab   :  { %3636 = vrot.lane.b32.xlu0 %v3635_v48, %s3836_s23  ;;  %3631 = vrot.lane.b32.xlu1 %v3635_v48, %s3837_s24  ;;  %v3645_v51 = vpack.i.bf16 %v1540_v50, %v1539_v49  ;;  %v1562_v59 = vpack.c.bf16 %v1540_v50, %v1540_v50 }
 0xcaf   :  { %3641 = vrot.lane.b32.xlu1 %v3635_v48, %s3838_s25 }
 0xcb3   :  { %1598 = vrot.lane.b32.xlu1 %v1589_v62, %s3839_s26 }
 0xcb7   :  { %1647 = vrot.lane.b32.xlu1 %v4290_v54, %s3839_s26 }
 0xd1d   :  { %v3637_v55 = vpop.permute.xlu0 %3636  ;;  %v3632_v56 = vpop.permute.xlu1 %3631 }
 0xd1e   :  { %v3634_v57 = vunpack.i.h.bf16 %v3632_v56  ;;  %v3633_v60 = vunpack.i.l.bf16 %v3632_v56  ;;  %v3638_v61 = vunpack.i.l.bf16 %v3637_v55  ;;  %v3639_v5 = vunpack.i.h.bf16 %v3637_v55 }
 0xd20   :  { %v4294_v63 = vpack.c.bf16 %v3634_v57, %v3634_v57  ;;  %v4296_v1 = vpack.c.bf16 %v3633_v60, %v3633_v60  ;;  %v4302_v7 = vpack.c.bf16 %v3638_v61, %v3638_v61  ;;  %v4308_v11 = vpack.c.bf16 %v3639_v5, %v3639_v5 }
 0xd21   :  { %v3642_v4 = vpop.permute.xlu1 %3641 }
 0xd22   :  { %1696 = vrot.lane.b32.xlu0 %v4296_v1, %s3839_s26  ;;  %1745 = vrot.lane.b32.xlu1 %v4294_v63, %s3839_s26  ;;  %v3644_v12 = vunpack.i.h.bf16 %v3642_v4  ;;  %v3643_v14 = vunpack.i.l.bf16 %v3642_v4 }
 0xd24   :  { %v4314_v6 = vpack.c.bf16 %v3644_v12, %v3644_v12  ;;  %v4316_v17 = vpack.c.bf16 %v3643_v14, %v3643_v14 }
 0xd25   :  { %v1599_v8 = vpop.permute.xlu1 %1598 }
 0xd26   :  { %v1604_v9 = vsel %vm214_vm2, %v1599_v8, 0  ;;  %1794 = vrot.lane.b32.xlu1 %v4302_v7, %s3839_s26  ;;  %3646 = vrot.lane.b32.xlu0 %v3645_v51, %s3837_s24 }
 0xd27   :  { %3422 = vmatpush3.bf16.xpose.msra.mxu0 %v1604_v9 }
 0xd28   :  { %3427 = vmatprep.subr.bf16.mxu0 %v3834_v15 }
 0xd29   :  { %v1648_v58 = vpop.permute.xlu1 %1647 }
 0xd2a   :  { %3651 = vrot.lane.b32.xlu1 %v3645_v51, %s3836_s23  ;;  %1843 = vrot.lane.b32.xlu0 %v4308_v11, %s3839_s26  ;;  %v1653_v18 = vsel %vm214_vm2, %v1648_v58, 0 }
 0xd2e   :  { %3424 = vmatmul.mubr.msk.bf16.vlgmr.msra.gmra.mrb[40].mxu0 %vm214_vm2, %v1561_v16  ;;  %1941 = vrot.lane.b32.xlu1 %v4314_v6, %s3839_s26 }
 0xd2f   :  { %1892 = vrot.lane.b32.xlu0 %v4316_v17, %s3839_s26  ;;  %3428 = vmatpush3.bf16.xpose.msra.mxu0 %v1653_v18 }
 0xd30   :  { %3429 = vmatprep.mubr.msk.bf16.mxu0 %vm3835_vm1, %v3834_v15  ;;  %3433 = vmatprep.subr.bf16.mxu0 %v3834_v15 }
 0xd32   :  { %2093 = vrot.lane.b32.xlu1 %v1589_v62, %s3840_s27 }
 0xd33   :  { %3656 = vrot.lane.b32.xlu0 %v3645_v51, %s3838_s25 }
 0xd36   :  { %3430 = vmatmul.mubr.msk.bf16.vlgmr.msra.gmra.mrb[44].mxu0 %vm214_vm2, %v1562_v59 }
 0xd37   :  { %3435 = vmatprep.mubr.msk.bf16.mxu0 %vm3835_vm1, %v3834_v15 }
 0xd94   :  { %v1697_v19 = vpop.permute.xlu0 %1696  ;;  %v1746_v20 = vpop.permute.xlu1 %1745 }
 0xd95   :  { %v1702_v0 = vsel %vm214_vm2, %v1697_v19, 0  ;;  %v1751_v21 = vsel %vm214_vm2, %v1746_v20, 0 }
 0xd96   :  { %3434 = vmatpush3.bf16.xpose.msra.mxu0 %v1702_v0  ;;  %3440 = vmatpush3.bf16.xpose.msra.mxu1 %v1751_v21 }
 0xd97   :  { %3445 = vmatprep.subr.bf16.mxu0 %v3834_v15  ;;  %3451 = vmatprep.subr.bf16.mxu1 %v3834_v15 }
 0xd98   :  { %v1795_v22 = vpop.permute.xlu1 %1794  ;;  %v3647_v23 = vpop.permute.xlu0 %3646 }
 0xd99   :  { %v3649_v24 = vunpack.i.h.bf16 %v3647_v23  ;;  %v3648_v25 = vunpack.i.l.bf16 %v3647_v23  ;;  %v1800_v28 = vsel %vm214_vm2, %v1795_v22, 0 }
 0xd9b   :  { %v1564_v26 = vpack.c.bf16 %v3649_v24, %v3649_v24  ;;  %v1563_v3 = vpack.c.bf16 %v3648_v25, %v3648_v25 }
 0xd9c   :  { %v3652_v2 = vpop.permute.xlu1 %3651  ;;  %v1844_v27 = vpop.permute.xlu0 %1843 }
 0xd9d   :  { %v1849_v29 = vsel %vm214_vm2, %v1844_v27, 0  ;;  %3436 = vmatmul.mubr.msk.bf16.vlgmr.msra.gmra.mrb[48].mxu0 %vm214_vm2, %v1563_v3  ;;  %3442 = vmatmul.mubr.msk.bf16.vlgmr.msra.gmra.mrb[44].mxu1 %vm214_vm2, %v1564_v26  ;;  %v3654_v30 = vunpack.i.h.bf16 %v3652_v2  ;;  %v3653_v31 = vunpack.i.l.bf16 %v3652_v2 }
 0xd9e   :  { %3446 = vmatpush3.bf16.xpose.msra.mxu0 %v1800_v28  ;;  %3452 = vmatpush3.bf16.xpose.msra.mxu1 %v1849_v29 }
 0xd9f   :  { %3447 = vmatprep.mubr.msk.bf16.mxu0 %vm3835_vm1, %v3834_v15  ;;  %3453 = vmatprep.mubr.msk.bf16.mxu1 %vm3835_vm1, %v3834_v15  ;;  %v1566_v46 = vpack.c.bf16 %v3654_v30, %v3654_v30  ;;  %v1565_v52 = vpack.c.bf16 %v3653_v31, %v3653_v31 }
 0xda0   :  { %3457 = vmatprep.subr.bf16.mxu0 %v3834_v15  ;;  %3463 = vmatprep.subr.bf16.mxu1 %v3834_v15  ;;  %v1942_v45 = vpop.permute.xlu1 %1941 }
 0xda1   :  { %v1893_v32 = vpop.permute.xlu0 %1892  ;;  %v1947_v36 = vsel %vm214_vm2, %v1942_v45, 0 }
 0xda2   :  { %v1898_v38 = vsel %vm214_vm2, %v1893_v32, 0 }
 0xda4   :  { %v2094_v42 = vpop.permute.xlu1 %2093 }
 0xda5   :  { %v3657_v39 = vpop.permute.xlu0 %3656  ;;  %3448 = vmatmul.mubr.msk.bf16.vlgmr.msra.gmra.mrb[52].mxu0 %vm214_vm2, %v1565_v52  ;;  %3454 = vmatmul.mubr.msk.bf16.vlgmr.msra.gmra.mrb[48].mxu1 %vm214_vm2, %v1566_v46  ;;  %v2099_v44 = vsel %vm715_vm4, %v2094_v42, 0 }
 0xda6   :  { %3458 = vmatpush3.bf16.xpose.msra.mxu0 %v1898_v38  ;;  %3464 = vmatpush3.bf16.xpose.msra.mxu1 %v1947_v36  ;;  %v3659_v40 = vunpack.i.h.bf16 %v3657_v39  ;;  %v3658_v41 = vunpack.i.l.bf16 %v3657_v39 }
 0xda7   :  { %3459 = vmatprep.mubr.msk.bf16.mxu0 %vm3835_vm1, %v3834_v15  ;;  %3465 = vmatprep.mubr.msk.bf16.mxu1 %vm3835_vm1, %v3834_v15 }
 0xda8   :  { %3469 = vmatprep.subr.bf16.mxu0 %v3834_v15  ;;  %3475 = vmatprep.subr.bf16.mxu1 %v3834_v15  ;;  %v1568_v43 = vpack.c.bf16 %v3659_v40, %v3659_v40  ;;  %v1567_v53 = vpack.c.bf16 %v3658_v41, %v3658_v41 }
 0xdad   :  { %3460 = vmatmul.mubr.msk.bf16.vlgmr.msra.gmra.mrb[56].mxu0 %vm214_vm2, %v1567_v53  ;;  %3466 = vmatmul.mubr.msk.bf16.vlgmr.msra.gmra.mrb[52].mxu1 %vm214_vm2, %v1568_v43 }
 0xdae   :  { %3470 = vmatpush3.bf16.msra.mxu0 %v2099_v44  ;;  %3477 = vmatprep.mubr.msk.bf16.mxu1 %vm3835_vm1, %v3834_v15 }
 0xdaf   :  { %3471 = vmatprep.mubr.msk.bf16.mxu0 %vm3835_vm1, %v3834_v15  ;;  %3481 = vmatprep.subr.bf16.mxu0 %v3834_v15 }
 0xe01   :  { %v1640_v37 = vpop.f32.mrb[40].mxu0 }
 0xe02   :  { %v4366_v47 = vsel %vm4018_vm3, %v1640_v37, -1e+09  ;;  %v3425_v48 = vpop.f32.mrb[41].mxu0 }
 0xe03   :  { %v1643_v49 = vpop.f32.mrb[42].mxu0  ;;  %v1997_v50 = vsel %vm214_vm2, %v4366_v47, -inf }
 0xe04   :  { %1998 = vmax.xlane.f32.xlu1 %v1997_v50  ;;  %v3426_v51 = vpop.f32.mrb[43].mxu0 }
 0xe09   :  { %v1689_v62 = vpop.f32.mrb[44].mxu0 }
 0xe0a   :  { %v1990_v55 = vsel %vm4018_vm3, %v1689_v62, -1e+09  ;;  %v3431_v56 = vpop.f32.mrb[45].mxu0 }
 0xe0b   :  { %v1692_v57 = vpop.f32.mrb[46].mxu0  ;;  %v2000_v60 = vsel %vm214_vm2, %v1990_v55, -inf }
 0xe0c   :  { %2001 = vmax.xlane.f32.xlu0 %v2000_v60  ;;  %v3432_v61 = vpop.f32.mrb[47].mxu0 }
 0xe70   :  { %v1738_v4 = vpop.f32.mrb[48].mxu0  ;;  %v1787_v5 = vpop.f32.mrb[44].mxu1 }
 0xe71   :  { %v1991_v8 = vsel %vm4018_vm3, %v1738_v4, -1e+09  ;;  %v3437_v9 = vpop.f32.mrb[49].mxu0  ;;  %v3443_v12 = vpop.f32.mrb[45].mxu1  ;;  %v1992_v18 = vsel %vm4018_vm3, %v1787_v5, -1e+09 }
 0xe72   :  { %v1741_v14 = vpop.f32.mrb[50].mxu0  ;;  %v1790_v58 = vpop.f32.mrb[46].mxu1  ;;  %v2003_v16 = vsel %vm214_vm2, %v1991_v8, -inf  ;;  %v2006_v20 = vsel %vm214_vm2, %v1992_v18, -inf }
 0xe73   :  { %2004 = vmax.xlane.f32.xlu0 %v2003_v16  ;;  %v3438_v59 = vpop.f32.mrb[51].mxu0  ;;  %v3444_v19 = vpop.f32.mrb[47].mxu1 }
 0xe77   :  { %2007 = vmax.xlane.f32.xlu0 %v2006_v20 }
 0xe78   :  { %v1836_v0 = vpop.f32.mrb[52].mxu0  ;;  %v1885_v21 = vpop.f32.mrb[48].mxu1 }
 0xe79   :  { %v1993_v22 = vsel %vm4018_vm3, %v1836_v0, -1e+09  ;;  %v4383_v23 = vsel %vm4018_vm3, %v1885_v21, -1e+09  ;;  %v3449_v24 = vpop.f32.mrb[53].mxu0  ;;  %v3455_v25 = vpop.f32.mrb[49].mxu1 }
 0xe7a   :  { %v1839_v26 = vpop.f32.mrb[54].mxu0  ;;  %v1888_v3 = vpop.f32.mrb[50].mxu1  ;;  %v2009_v2 = vsel %vm214_vm2, %v1993_v22, -inf  ;;  %v2012_v27 = vsel %vm214_vm2, %v4383_v23, -inf }
 0xe7b   :  { %2010 = vmax.xlane.f32.xlu1 %v2009_v2  ;;  %v3450_v28 = vpop.f32.mrb[55].mxu0  ;;  %2013 = vmax.xlane.f32.xlu0 %v2012_v27  ;;  %v3456_v29 = vpop.f32.mrb[51].mxu1 }
 0xe80   :  { %v1934_v30 = vpop.f32.mrb[56].mxu0  ;;  %v1983_v31 = vpop.f32.mrb[52].mxu1 }
 0xe81   :  { %v1995_v32 = vsel %vm4018_vm3, %v1934_v30, -1e+09  ;;  %v4392_v45 = vsel %vm4018_vm3, %v1983_v31, -1e+09  ;;  %v3461_v46 = vpop.f32.mrb[57].mxu0  ;;  %v3467_v52 = vpop.f32.mrb[53].mxu1 }
 0xe82   :  { %v1937_v36 = vpop.f32.mrb[58].mxu0  ;;  %v1986_v38 = vpop.f32.mrb[54].mxu1  ;;  %v2015_v39 = vsel %vm214_vm2, %v1995_v32, -inf  ;;  %v2018_v40 = vsel %vm214_vm2, %v4392_v45, -inf }
 0xe83   :  { %2016 = vmax.xlane.f32.xlu1 %v2015_v39  ;;  %v3462_v41 = vpop.f32.mrb[59].mxu0  ;;  %2019 = vmax.xlane.f32.xlu0 %v2018_v40  ;;  %v3468_v42 = vpop.f32.mrb[55].mxu1 }
 0xe91   :  { %v1999_v53 = vpop.xlane.xlu1 %1998 }
 0xe92   :  { %v2021_v44 = vsub.f32 %v4366_v47, %v1999_v53 }
 0xe94   :  { %2189 = vrot.lane.b32.xlu1 %v4296_v1, %s3840_s27  ;;  %v2029_v48 = vmul.f32 1.442695, %v2021_v44 }
 0xe98   :  { %2237 = vrot.lane.b32.xlu1 %v4294_v63, %s3840_s27 }
 0xe99   :  { %2141 = vrot.lane.b32.xlu0 %v4290_v54, %s3840_s27  ;;  %v2002_v35 = vpop.xlane.xlu0 %2001 }
 0xe9a   :  { %v2022_v43 = vsub.f32 %v1990_v55, %v2002_v35 }
 0xe9c   :  { %v2031_v37 = vmul.f32 1.442695, %v2022_v43 }
 0xe9e   :  { %3758 = vpow2.f32 %v2031_v37 }
 0xe9f   :  { %3760 = vpow2.f32 %v2029_v48 }
 0xea8   :  { %v3759_v49 = vpop.eup %3758 }
 0xea9   :  { %v2048_v50 = vsel %vm214_vm2, %v3759_v49, 0.0  ;;  %v4405_v51 = vpop.eup %3760 }
 0xeaa   :  { %v2045_v63 = vsel %vm214_vm2, %v4405_v51, 0.0 }
 0xeb8   :  { %2049 = vadd.xlane.f32.xlu0 %v2048_v50 }
 0xebc   :  { %2046 = vadd.xlane.f32.xlu1 %v2045_v63 }
 0xecd   :  { %2285 = vrot.lane.b32.xlu1 %v4302_v7, %s3840_s27 }
 0xf00   :  { %v2005_v54 = vpop.xlane.xlu0 %2004 }
 0xf01   :  { %v2023_v1 = vsub.f32 %v1991_v8, %v2005_v54 }
 0xf03   :  { %v2033_v47 = vmul.f32 1.442695, %v2023_v1 }
 0xf04   :  { %v2008_v62 = vpop.xlane.xlu0 %2007 }
 0xf05   :  { %3762 = vpow2.f32 %v2033_v47  ;;  %v2024_v55 = vsub.f32 %v1992_v18, %v2008_v62 }
 0xf07   :  { %v2035_v56 = vmul.f32 1.442695, %v2024_v55 }
 0xf08   :  { %v2011_v57 = vpop.xlane.xlu1 %2010  ;;  %v2014_v4 = vpop.xlane.xlu0 %2013 }
 0xf09   :  { %3764 = vpow2.f32 %v2035_v56  ;;  %v2025_v60 = vsub.f32 %v1993_v22, %v2011_v57  ;;  %v2026_v22 = vsub.f32 %v4383_v23, %v2014_v4 }
 0xf0b   :  { %v2037_v61 = vmul.f32 1.442695, %v2025_v60  ;;  %v2039_v24 = vmul.f32 1.442695, %v2026_v22 }
 0xf0d   :  { %3766 = vpow2.f32 %v2037_v61 }
 0xf0f   :  { %v4411_v5 = vpop.eup %3762 }
 0xf10   :  { %v2017_v9 = vpop.xlane.xlu1 %2016  ;;  %v2020_v12 = vpop.xlane.xlu0 %2019  ;;  %v2051_v7 = vsel %vm214_vm2, %v4411_v5, 0.0 }
 0xf11   :  { %v2027_v14 = vsub.f32 %v1995_v32, %v2017_v9  ;;  %2052 = vadd.xlane.f32.xlu1 %v2051_v7  ;;  %v2028_v25 = vsub.f32 %v4392_v45, %v2020_v12 }
 0xf13   :  { %v4415_v8 = vpop.eup %3764  ;;  %v2041_v58 = vmul.f32 1.442695, %v2027_v14  ;;  %v2043_v26 = vmul.f32 1.442695, %v2028_v25 }
 0xf14   :  { %v2142_v16 = vpop.permute.xlu0 %2141  ;;  %v2054_v18 = vsel %vm214_vm2, %v4415_v8, 0.0  ;;  %v2190_v3 = vpop.permute.xlu1 %2189 }
 0xf15   :  { %3768 = vpow2.f32 %v2041_v58  ;;  %v2147_v59 = vsel %vm715_vm4, %v2142_v16, 0  ;;  %2055 = vadd.xlane.f32.xlu0 %v2054_v18  ;;  %v2195_v38 = vsel %vm715_vm4, %v2190_v3, 0 }
 0xf16   :  { %3476 = vmatpush3.bf16.msra.mxu1 %v2147_v59  ;;  %3770 = vpow2.f32 %v2039_v24 }
 0xf17   :  { %v4420_v19 = vpop.eup %3766  ;;  %3487 = vmatprep.subr.bf16.mxu1 %v3834_v15  ;;  %3772 = vpow2.f32 %v2043_v26 }
 0xf18   :  { %v2057_v20 = vsel %vm214_vm2, %v4420_v19, 0.0  ;;  %v2238_v2 = vpop.permute.xlu1 %2237 }
 0xf19   :  { %2058 = vadd.xlane.f32.xlu1 %v2057_v20  ;;  %v2243_v46 = vsel %vm715_vm4, %v2238_v2, 0 }
 0xf1f   :  { %v4425_v0 = vpop.eup %3768 }
 0xf20   :  { %v2063_v21 = vsel %vm214_vm2, %v4425_v0, 0.0  ;;  %v4435_v28 = vpop.eup %3770 }
 0xf21   :  { %2064 = vadd.xlane.f32.xlu1 %v2063_v21  ;;  %v4439_v30 = vpop.eup %3772 }
 0xf2b   :  { %2333 = vrot.lane.b32.xlu0 %v4308_v11, %s3840_s27  ;;  %v2060_v11 = vsel %vm214_vm2, %v4435_v28, 0.0 }
 0xf32   :  { %2381 = vrot.lane.b32.xlu1 %v4316_v17, %s3840_s27  ;;  %v2066_v17 = vsel %vm214_vm2, %v4439_v30, 0.0 }
 0xf45   :  { %v2050_v27 = vpop.xlane.xlu0 %2049 }
 0xf46   :  { %3774 = vrcp.f32 %v2050_v27 }
 0xf49   :  { %v2047_v29 = vpop.xlane.xlu1 %2046 }
 0xf4a   :  { %3776 = vrcp.f32 %v2047_v29  ;;  %2061 = vadd.xlane.f32.xlu0 %v2060_v11 }
 0xf4d   :  { %v2286_v39 = vpop.permute.xlu1 %2285 }
 0xf4e   :  { %2067 = vadd.xlane.f32.xlu0 %v2066_v17  ;;  %v2291_v37 = vsel %vm715_vm4, %v2286_v39, 0  ;;  %v3693_v39 = vld [vmem:[%s4644_s4 + $0x18] sm:$0xff]  }
 0xf50   :  { %v3775_v23 = vpop.eup %3774 }
 0xf51   :  { %v2078_v31 = vmul.f32 %v3775_v23, %v3759_v49 }
 0xf53   :  { %v2086_v32 = vpack.c.bf16 %v2078_v31, %v2078_v31 }
 0xf54   :  { %v3777_v45 = vpop.eup %3776 }
 0xf55   :  { %v2077_v52 = vmul.f32 %v3777_v45, %v4405_v51  ;;  %3478 = vmatmul.mubr.msk.bf16.vlgmr.msra.gmra.mrb[56].mxu1 %vm214_vm2, %v2086_v32 }
 0xf56   :  { %3488 = vmatpush3.bf16.msra.mxu1 %v2243_v46  ;;  %3489 = vmatprep.mubr.msk.bf16.mxu1 %vm3835_vm1, %v3834_v15 }
 0xf57   :  { %v2085_v36 = vpack.c.bf16 %v2077_v52, %v2077_v52  ;;  %3499 = vmatprep.subr.bf16.mxu1 %v3834_v15 }
 0xf59   :  { %3472 = vmatmul.mubr.msk.bf16.vlgmr.msra.gmra.mrb[60].mxu0 %vm214_vm2, %v2085_v36  ;;  %v3692_v36 = vld [vmem:[%s4644_s4 + $0x10] sm:$0xff]   ;;  %s3036_s4 = sshll.u32 %s3847_s18, 4  ;;  %s3037_s4 = int_to_ptr.vmem [resolvable:$true] %s3036_s4 }
 0xf5a   :  { %3482 = vmatpush3.bf16.msra.mxu0 %v2195_v38  ;;  %3483 = vmatprep.mubr.msk.bf16.mxu0 %vm3835_vm1, %v3834_v15  ;;  %p3815_p1 = scmp.lt.s32.totalorder %s3037_s4, %s3037_s4 }
 0xf5b   :  { %3493 = vmatprep.subr.bf16.mxu0 %v3834_v15 }
 0xf64   :  { %2429 = vrot.lane.b32.xlu0 %v4314_v6, %s3840_s27 }
 0xf9e   :  { %v2053_v40 = vpop.xlane.xlu1 %2052 }
 0xf9f   :  { %3778 = vrcp.f32 %v2053_v40 }
 0xfa2   :  { %v2056_v41 = vpop.xlane.xlu0 %2055 }
 0xfa3   :  { %3780 = vrcp.f32 %v2056_v41 }
 0xfa6   :  { %v2059_v42 = vpop.xlane.xlu1 %2058  ;;  %v2334_v6 = vpop.permute.xlu0 %2333 }
 0xfa7   :  { %3782 = vrcp.f32 %v2059_v42  ;;  %v2339_v54 = vsel %vm715_vm4, %v2334_v6, 0 }
 0xfa9   :  { %v3779_v35 = vpop.eup %3778 }
 0xfaa   :  { %v2079_v43 = vmul.f32 %v3779_v35, %v4411_v5 }
 0xfac   :  { %v2087_v53 = vpack.c.bf16 %v2079_v43, %v2079_v43 }
 0xfad   :  { %v3781_v44 = vpop.eup %3780 }
 0xfae   :  { %v2080_v48 = vmul.f32 %v3781_v44, %v4415_v8  ;;  %3484 = vmatmul.mubr.msk.bf16.vlgmr.msra.gmra.mrb[64].mxu0 %vm214_vm2, %v2087_v53  ;;  %v2065_v49 = vpop.xlane.xlu1 %2064 }
 0xfaf   :  { %3494 = vmatpush3.bf16.msra.mxu0 %v2291_v37  ;;  %3784 = vrcp.f32 %v2065_v49  ;;  %3495 = vmatprep.mubr.msk.bf16.mxu0 %vm3835_vm1, %v3834_v15 }
 0xfb0   :  { %v2088_v50 = vpack.c.bf16 %v2080_v48, %v2080_v48  ;;  %3505 = vmatprep.subr.bf16.mxu0 %v3834_v15 }
 0xfb1   :  { %v3783_v51 = vpop.eup %3782 }
 0xfb2   :  { %v2081_v63 = vmul.f32 %v3783_v51, %v4420_v19  ;;  %3490 = vmatmul.mubr.msk.bf16.vlgmr.msra.gmra.mrb[60].mxu1 %vm214_vm2, %v2088_v50  ;;  %v2382_v1 = vpop.permute.xlu1 %2381 }
 0xfb3   :  { %3500 = vmatpush3.bf16.msra.mxu1 %v2339_v54  ;;  %3501 = vmatprep.mubr.msk.bf16.mxu1 %vm3835_vm1, %v3834_v15  ;;  %v2387_v62 = vsel %vm715_vm4, %v2382_v1, 0 }
 0xfb4   :  { %v2089_v47 = vpack.c.bf16 %v2081_v63, %v2081_v63  ;;  %3511 = vmatprep.subr.bf16.mxu1 %v3834_v15 }
 0xfb6   :  { %3496 = vmatmul.mubr.msk.bf16.vlgmr.msra.gmra.mrb[68].mxu0 %vm214_vm2, %v2089_v47 }
 0xfb7   :  { %3506 = vmatpush3.bf16.msra.mxu0 %v2387_v62  ;;  %3507 = vmatprep.mubr.msk.bf16.mxu0 %vm3835_vm1, %v3834_v15 }
 0xfb8   :  { %3517 = vmatprep.subr.bf16.mxu0 %v3834_v15 }
 0xfb9   :  { %v3785_v55 = vpop.eup %3784 }
 0xfba   :  { %v2083_v56 = vmul.f32 %v3785_v55, %v4425_v0 }
 0xfbc   :  { %v2091_v57 = vpack.c.bf16 %v2083_v56, %v2083_v56 }
 0xfbe   :  { %3508 = vmatmul.mubr.msk.bf16.vlgmr.msra.gmra.mrb[72].mxu0 %vm214_vm2, %v2091_v57 }
 0xfbf   :  { %3521 = vmatprep.mubr.msk.bf16.mxu0 %vm3835_vm1, %v3834_v15  ;;  %3518 = vmatpush3.bf16.msra.mxu0 %v3692_v36  ;;  %v3123_v36 = vld [vmem:[%s4642_s2 + $0xc] ss:$0 sm:$0xff] }
 0xfc0   :  { %3519 = vmatprep.subr.bf16.mxu0 %v3834_v15 }
 0xfc3   :  { %3520 = vmatpush3.bf16.msra.mxu0 %v3693_v39 }
 0xfc4   :  { %3533 = vmatprep.subr.bf16.mxu0 %v3834_v15 }
 0xfd7   :  { %v2062_v60 = vpop.xlane.xlu0 %2061 }
 0xfd8   :  { %3786 = vrcp.f32 %v2062_v60 }
 0xfdb   :  { %v2068_v61 = vpop.xlane.xlu0 %2067 }
 0xfdc   :  { %3788 = vrcp.f32 %v2068_v61 }
 0xfdf   :  { %v2430_v9 = vpop.permute.xlu0 %2429 }
 0xfe0   :  { %v2435_v14 = vsel %vm715_vm4, %v2430_v9, 0  ;;  %v3122_v9 = vld [vmem:[%s4642_s2 + $0xb] ss:$0 sm:$0xff] }
 0xfe2   :  { %v3787_v4 = vpop.eup %3786 }
 0xfe3   :  { %v2082_v5 = vmul.f32 %v3787_v4, %v4435_v28 }
 0xfe5   :  { %v2090_v12 = vpack.c.bf16 %v2082_v5, %v2082_v5 }
 0xfe6   :  { %v3789_v7 = vpop.eup %3788 }
 0xfe7   :  { %3502 = vmatmul.mubr.msk.bf16.vlgmr.msra.gmra.mrb[64].mxu1 %vm214_vm2, %v2090_v12  ;;  %v2084_v8 = vmul.f32 %v3789_v7, %v4439_v30 }
 0xfe8   :  { %3512 = vmatpush3.bf16.msra.mxu1 %v2435_v14  ;;  %3513 = vmatprep.mubr.msk.bf16.mxu1 %vm3835_vm1, %v3834_v15 }
 0xfe9   :  { %3525 = vmatprep.subr.bf16.mxu1 %v3834_v15  ;;  %v2092_v58 = vpack.c.bf16 %v2084_v8, %v2084_v8 }
 0xfef   :  { %3514 = vmatmul.mubr.msk.bf16.vlgmr.msra.gmra.mrb[68].mxu1 %vm214_vm2, %v2092_v58 }
 0xff0   :  { %3529 = vmatprep.mubr.msk.bf16.mxu1 %vm3835_vm1, %v3834_v15 }
0x1028   :  { %v2183_v16 = vpop.f32.mrb[56].mxu1 }
0x1029   :  { %v3479_v18 = vpop.f32.mrb[57].mxu1 }
0x102a   :  { %v2186_v59 = vpop.f32.mrb[58].mxu1 }
0x102b   :  { %v3480_v19 = vpop.f32.mrb[59].mxu1 }
0x102c   :  { %v2135_v20 = vpop.f32.mrb[60].mxu0 }
0x102d   :  { %v3473_v0 = vpop.f32.mrb[61].mxu0 }
0x102e   :  { %v2138_v21 = vpop.f32.mrb[62].mxu0 }
0x102f   :  { %v3474_v22 = vpop.f32.mrb[63].mxu0 }
0x1081   :  { %v2231_v24 = vpop.f32.mrb[64].mxu0 }
0x1082   :  { %v3485_v25 = vpop.f32.mrb[65].mxu0 }
0x1083   :  { %v2234_v26 = vpop.f32.mrb[66].mxu0 }
0x1084   :  { %v3486_v3 = vpop.f32.mrb[67].mxu0 }
0x1085   :  { %v2279_v2 = vpop.f32.mrb[60].mxu1 }
0x1086   :  { %v3660_v27 = vpack.i.bf16 %v2279_v2, %v2231_v24  ;;  %v3491_v28 = vpop.f32.mrb[61].mxu1 }
0x1087   :  { %v2282_v29 = vpop.f32.mrb[62].mxu1 }
0x1088   :  { %3661 = vrot.lane.b32.xlu1 %v3660_v27, %s3841_s28  ;;  %v3492_v11 = vpop.f32.mrb[63].mxu1  ;;  %v3694_v29 = vld [vmem:[%s4645_s5 + $0x10] sm:$0xff]  }
0x1089   :  { %v2327_v30 = vpop.f32.mrb[68].mxu0  ;;  %3526 = vmatpush3.bf16.msra.mxu1 %v3694_v29  ;;  %v3695_v11 = vld [vmem:[%s4645_s5 + $0x18] sm:$0xff]  }
0x108a   :  { %v3497_v17 = vpop.f32.mrb[69].mxu0  ;;  %3527 = vmatprep.subr.bf16.mxu1 %v3834_v15 }
0x108b   :  { %v2330_v23 = vpop.f32.mrb[70].mxu0 }
0x108c   :  { %v3498_v31 = vpop.f32.mrb[71].mxu0 }
0x108d   :  { %3528 = vmatpush3.bf16.msra.mxu1 %v3695_v11  ;;  %v3844_v11 = vmov 0  }
0x108e   :  { %3675 = vset.pattern.permute.xlu0 %v3844_v11 }
0x1091   :  { %v2423_v32 = vpop.f32.mrb[72].mxu0 }
0x1092   :  { %v3509_v45 = vpop.f32.mrb[73].mxu0 }
0x1093   :  { %v2426_v46 = vpop.f32.mrb[74].mxu0 }
0x1094   :  { %v3510_v52 = vpop.f32.mrb[75].mxu0 }
0x10ba   :  { %v2375_v38 = vpop.f32.mrb[64].mxu1 }
0x10bb   :  { %v3665_v40 = vpack.i.bf16 %v2375_v38, %v2327_v30  ;;  %v3503_v41 = vpop.f32.mrb[65].mxu1 }
0x10bc   :  { %v2378_v42 = vpop.f32.mrb[66].mxu1  ;;  %v3124_v41 = vld [vmem:[%s4642_s2 + $0xd] ss:$0 sm:$0xff] }
0x10bd   :  { %3666 = vrot.lane.b32.xlu0 %v3665_v40, %s3842_s10  ;;  %v3504_v35 = vpop.f32.mrb[67].mxu1 }
0x10c2   :  { %v2471_v43 = vpop.f32.mrb[68].mxu1 }
0x10c3   :  { %v3670_v53 = vpack.i.bf16 %v2471_v43, %v2423_v32  ;;  %v3515_v44 = vpop.f32.mrb[69].mxu1 }
0x10c4   :  { %v2474_v37 = vpop.f32.mrb[70].mxu1  ;;  %v3696_v44 = vld [vmem:[%s4646_s6 + $0x40] sm:$0xff]  }
0x10c5   :  { %3671 = vrot.lane.b32.xlu1 %v3670_v53, %s3843_s13  ;;  %v3516_v48 = vpop.f32.mrb[71].mxu1  ;;  %v3697_v37 = vld [vmem:[%s4646_s6 + $0x48] sm:$0xff]  }
0x10c6   :  { %v3698_v48 = vld [vmem:[%s4646_s6 + $0x50] sm:$0xff]  }
0x10fa   :  { %v3662_v49 = vpop.permute.xlu1 %3661 }
0x10fb   :  { %v3664_v50 = vunpack.i.h.bf16 %v3662_v49  ;;  %v3663_v51 = vunpack.i.l.bf16 %v3662_v49  ;;  %v3699_v49 = vld [vmem:[%s4646_s6 + $0x58] sm:$0xff]  }
0x10fd   :  { %v2502_v47 = vsel %vm214_vm2, %v2183_v16, %v3664_v50  ;;  %v2501_v62 = vsel %vm214_vm2, %v2135_v20, %v3663_v51  ;;  %v3701_v50 = vld [vmem:[%s4646_s6 + $0x68] sm:$0xff]   ;;  %v3702_v51 = vld [vmem:[%s4646_s6 + $0x70] sm:$0xff]  }
0x112f   :  { %v3667_v6 = vpop.permute.xlu0 %3666 }
0x1130   :  { %v3669_v63 = vunpack.i.h.bf16 %v3667_v6  ;;  %v3668_v54 = vunpack.i.l.bf16 %v3667_v6  ;;  %v3700_v6 = vld [vmem:[%s4646_s6 + $0x60] sm:$0xff]  }
0x1132   :  { %v2504_v57 = vsel %vm1121_vm5, %v2502_v47, %v3669_v63  ;;  %v2503_v60 = vsel %vm1121_vm5, %v2501_v62, %v3668_v54  ;;  %v3703_v63 = vld [vmem:[%s4646_s6 + $0x78] sm:$0xff]   ;;  %v3129_v54 = vld [vmem:[%s4642_s2 + $0xe] ss:$0 sm:$0xff] }
0x1137   :  { %v3672_v1 = vpop.permute.xlu1 %3671 }
0x1138   :  { %v3674_v55 = vunpack.i.h.bf16 %v3672_v1  ;;  %v3673_v56 = vunpack.i.l.bf16 %v3672_v1 }
0x113a   :  { %v2506_v61 = vsel %vm1124_vm6, %v2504_v57, %v3674_v55  ;;  %v2505_v4 = vsel %vm1124_vm6, %v2503_v60, %v3673_v56 }
0x113b   :  { %v2507_v5 = vpack.c.bf16 %v2506_v61, %v2505_v4 }
0x113d   :  { %3522 = vmatmul.mubr.msk.bf16.vlgmr.msra.gmra.mrb[76].mxu0 %vm48_vm0, %v2507_v5 }
0x113e   :  { %3549 = vmatprep.mubr.msk.bf16.mxu0 %vm3835_vm1, %v3834_v15  ;;  %3534 = vmatpush3.bf16.msra.mxu0 %v3696_v44 }
0x113f   :  { %3535 = vmatprep.subr.bf16.mxu0 %v3834_v15 }
0x1142   :  { %3536 = vmatpush3.bf16.msra.mxu0 %v3697_v37 }
0x1143   :  { %3537 = vmatprep.subr.bf16.mxu0 %v3834_v15 }
0x1146   :  { %3538 = vmatpush3.bf16.msra.mxu0 %v3698_v48 }
0x1147   :  { %3539 = vmatprep.subr.bf16.mxu0 %v3834_v15 }
0x114a   :  { %3540 = vmatpush3.bf16.msra.mxu0 %v3699_v49  ;;  %v3161_v49 = vld [vmem:[%s4642_s2 + $0x11] ss:$0 sm:$0xff] }
0x114b   :  { %3541 = vmatprep.subr.bf16.mxu0 %v3834_v15 }
0x114e   :  { %3542 = vmatpush3.bf16.msra.mxu0 %v3700_v6 }
0x114f   :  { %3543 = vmatprep.subr.bf16.mxu0 %v3834_v15 }
0x1152   :  { %3544 = vmatpush3.bf16.msra.mxu0 %v3701_v50 }
0x1153   :  { %3545 = vmatprep.subr.bf16.mxu0 %v3834_v15 }
0x1156   :  { %3546 = vmatpush3.bf16.msra.mxu0 %v3702_v51 }
0x1157   :  { %3547 = vmatprep.subr.bf16.mxu0 %v3834_v15 }
0x115a   :  { %3548 = vmatpush3.bf16.msra.mxu0 %v3703_v63 }
0x1210   :  { %v2562_v12 = vpop.f32.mrb[76].mxu0 }
0x1211   :  { %v2569_v7 = vadd.f32 %v2562_v12, %v4253_v10  ;;  %v3523_v14 = vpop.f32.mrb[77].mxu0 }
0x1212   :  { %v2565_v8 = vpop.f32.mrb[78].mxu0 }
0x1213   :  { %v4512_v58 = vadd.f32 %v3122_v9, %v2569_v7  ;;  %v2570_v16 = vadd.f32 %v2565_v8, %v4256_v13  ;;  %v3524_v18 = vpop.f32.mrb[79].mxu0 }
0x1215   :  { %v4515_v59 = vadd.f32 %v3122_v9, %v2570_v16  ;;  %v2577_v19 = vsel %vm48_vm0, %v4512_v58, 0.0 }
0x1216   :  { %2578 = vadd.xlane.f32.xlu0 %v2577_v19 }
0x1217   :  { %v2580_v20 = vsel %vm48_vm0, %v4515_v59, 0.0 }
0x1218   :  { %2581 = vadd.xlane.f32.xlu1 %v2580_v20 }
0x12a3   :  { %v2579_v0 = vpop.xlane.xlu0 %2578 }
0x12a4   :  { %v2583_v21 = vmul.f32 0.03125, %v2579_v0  ;;  %v3151_v0 = vld [vmem:[%s4642_s2 + $0xf] ss:$0 sm:$0xff] }
0x12a5   :  { %v2582_v22 = vpop.xlane.xlu1 %2581 }
0x12a6   :  { %v2585_v24 = vsub.f32 %v4512_v58, %v2583_v21  ;;  %v2584_v25 = vmul.f32 0.03125, %v2582_v22 }
0x12a8   :  { %v2586_v26 = vsub.f32 %v4515_v59, %v2584_v25  ;;  %v2587_v3 = vmul.f32 %v2585_v24, %v2585_v24 }
0x12aa   :  { %v2589_v2 = vsel %vm48_vm0, %v2587_v3, 0.0  ;;  %v2588_v27 = vmul.f32 %v2586_v26, %v2586_v26 }
0x12ab   :  { %2590 = vadd.xlane.f32.xlu0 %v2589_v2 }
0x12ac   :  { %v2592_v28 = vsel %vm48_vm0, %v2588_v27, 0.0 }
0x12af   :  { %2593 = vadd.xlane.f32.xlu0 %v2592_v28 }
0x1338   :  { %v2591_v30 = vpop.xlane.xlu0 %2590 }
0x1339   :  { %v2595_v17 = vmul.f32 0.03125, %v2591_v30 }
0x133b   :  { %v2597_v23 = vadd.f32 1e-05, %v2595_v17 }
0x133c   :  { %v2594_v31 = vpop.xlane.xlu0 %2593 }
0x133d   :  { %3790 = vrsqrt.f32 %v2597_v23  ;;  %v2596_v32 = vmul.f32 0.03125, %v2594_v31 }
0x133f   :  { %v2598_v45 = vadd.f32 1e-05, %v2596_v32 }
0x1341   :  { %3792 = vrsqrt.f32 %v2598_v45 }
0x1347   :  { %v3791_v46 = vpop.eup %3790 }
0x1348   :  { %v2601_v52 = vmul.f32 %v3791_v46, %v2585_v24 }
0x134a   :  { %v2607_v39 = vmul.f32 %v3123_v36, %v2601_v52 }
0x134b   :  { %v3793_v38 = vpop.eup %3792 }
0x134c   :  { %v2602_v40 = vmul.f32 %v3793_v38, %v2586_v26  ;;  %v2613_v35 = vadd.f32 %v3124_v41, %v2607_v39  ;;  %v3846_v38 = vmov 0.0|0.0  }
0x134d   :  { %3568 = vmatprep.subr.bf16.mxu1 %v3846_v38 }
0x134e   :  { %v2608_v42 = vmul.f32 %v3123_v36, %v2602_v40  ;;  %v2885_v36 = vld [vmem:[%s4640_s0] sm:$0x3] }
0x1350   :  { %v2614_v43 = vadd.f32 %v3124_v41, %v2608_v42 }
0x1352   :  { %v2615_v53 = vpack.c.bf16 %v2614_v43, %v2613_v35 }
0x1354   :  { %3530 = vmatmul.mubr.msk.bf16.vlgmr.msra.gmra.mrb[72].mxu1 %vm48_vm0, %v2615_v53  ;;  %v3160_v53 = vld [vmem:[%s4642_s2 + $0x10] ss:$0 sm:$0xff] }
0x1355   :  { %3557 = vmatprep.mubr.msk.f32.mxu1 %vm3835_vm1, %v3834_v15 }
0x1427   :  { %v2674_v1 = vpop.f32.mrb[72].mxu1 }
0x1428   :  { %v2675_v47 = vadd.f32 %v3129_v54, %v2674_v1  ;;  %v3531_v62 = vpop.f32.mrb[73].mxu1 }
0x1429   :  { %v2677_v55 = vpop.f32.mrb[74].mxu1  ;;  %v3704_v62 = vld [vmem:[%s4647_s7] sm:$0xff]  }
0x142a   :  { %v3133_v56 = vmul.f32 -1.702, %v2675_v47  ;;  %v2678_v57 = vadd.f32 %v3129_v54, %v2677_v55  ;;  %v3532_v60 = vpop.f32.mrb[75].mxu1 }
0x142c   :  { %v2685_v61 = vmul.f32 1.442695, %v3133_v56  ;;  %v3134_v4 = vmul.f32 -1.702, %v2678_v57 }
0x142e   :  { %3794 = vpow2.f32 %v2685_v61  ;;  %v2687_v5 = vmul.f32 1.442695, %v3134_v4  ;;  %v3808_v61 = vld [vmem:[%s4641_s1] sm:$0xff] }
0x1430   :  { %3796 = vpow2.f32 %v2687_v5 }
0x1438   :  { %v3795_v9 = vpop.eup %3794 }
0x1439   :  { %v2689_v12 = vadd.f32 1.0, %v3795_v9 }
0x143a   :  { %v3797_v7 = vpop.eup %3796 }
0x143b   :  { %3798 = vrcp.f32 %v2689_v12  ;;  %v2690_v14 = vadd.f32 1.0, %v3797_v7  ;;  %v3809_v12 = vld [vmem:[%s4641_s1 + $0x8] sm:$0xff]  ;;  %s3810_s1 = scalar_lea.vmem %s3037_s4, 32 }
0x143c   :  { %p3811_p0 = scmp.ne.s32.totalorder %s3037_s4, %s3810_s1  ;;  %p3816_p2 = scmp.lt.s32.totalorder %s3810_s1, %s3810_s1 }
0x143d   :  { %3800 = vrcp.f32 %v2690_v14 }
0x143e   :  { %p3817_p3 = por %p3816_p2, %p3815_p1 }
0x1440   :  { %p3818_p4 = pnand %p3817_p3, %p3811_p0 }
0x1445   :  { %v3799_v8 = vpop.eup %3798 }
0x1446   :  { %v2695_v18 = vmul.f32 %v3799_v8, %v2675_v47 }
0x1447   :  { %v3801_v16 = vpop.eup %3800 }
0x1448   :  { %v2696_v19 = vmul.f32 %v3801_v16, %v2678_v57 }
0x144a   :  { %v2697_v20 = vpack.c.bf16 %v2696_v19, %v2695_v18 }
0x144c   :  { %3550 = vmatmul.mubr.bf16.vlgmr.msra.gmra.mrb[80].mxu0 %v2697_v20 }
0x151f   :  { %v2801_v21 = vpop.f32.mrb[80].mxu0 }
0x1520   :  { %v2802_v22 = vadd.f32 %v3151_v0, %v2801_v21  ;;  %v3551_v24 = vpop.f32.mrb[81].mxu0 }
0x1521   :  { %v2804_v25 = vpop.f32.mrb[82].mxu0 }
0x1522   :  { %v2808_v26 = vadd.f32 %v2802_v22, %v4512_v58  ;;  %v2805_v3 = vadd.f32 %v3151_v0, %v2804_v25  ;;  %v3552_v2 = vpop.f32.mrb[83].mxu0 }
0x1524   :  { %v2809_v27 = vadd.f32 %v2805_v3, %v4515_v59  ;;  %v2812_v28 = vsel %vm48_vm0, %v2808_v26, 0.0 }
0x1525   :  { %2813 = vadd.xlane.f32.xlu0 %v2812_v28 }
0x1526   :  { %v2815_v29 = vsel %vm48_vm0, %v2809_v27, 0.0 }
0x1527   :  { %2816 = vadd.xlane.f32.xlu1 %v2815_v29 }
0x15b2   :  { %v2814_v30 = vpop.xlane.xlu0 %2813 }
0x15b3   :  { %v2818_v17 = vmul.f32 0.03125, %v2814_v30 }
0x15b4   :  { %v2817_v23 = vpop.xlane.xlu1 %2816 }
0x15b5   :  { %v2820_v31 = vsub.f32 %v2808_v26, %v2818_v17  ;;  %v2819_v32 = vmul.f32 0.03125, %v2817_v23 }
0x15b7   :  { %v2821_v45 = vsub.f32 %v2809_v27, %v2819_v32  ;;  %v2822_v46 = vmul.f32 %v2820_v31, %v2820_v31 }
0x15b9   :  { %v2824_v58 = vsel %vm48_vm0, %v2822_v46, 0.0  ;;  %v2823_v52 = vmul.f32 %v2821_v45, %v2821_v45 }
0x15ba   :  { %2825 = vadd.xlane.f32.xlu0 %v2824_v58 }
0x15bb   :  { %v2827_v59 = vsel %vm48_vm0, %v2823_v52, 0.0 }
0x15bc   :  { %2828 = vadd.xlane.f32.xlu1 %v2827_v59 }
0x15cd   :  { %2852 = vrot.lane.b32.xlu1 %v4253_v10, %s3845_s22 }
0x15d0   :  { %2887 = vperm.xlu0 %3675, %v2885_v36  }
0x15d1   :  { %2854 = vrot.lane.b32.xlu1 %v4256_v13, %s3845_s22  ;;  %v2884_v13 = vmul.u32 8, %v4012_v33 }
0x15d5   :  { %2860 = vrot.lane.b32.xlu1 %v2808_v26, %s3840_s27 }
0x15d9   :  { %2862 = vrot.lane.b32.xlu1 %v2809_v27, %s3840_s27 }
0x1647   :  { %v2826_v39 = vpop.xlane.xlu0 %2825 }
0x1648   :  { %v2830_v40 = vmul.f32 0.03125, %v2826_v39 }
0x1649   :  { %v2829_v41 = vpop.xlane.xlu1 %2828 }
0x164a   :  { %v2832_v42 = vadd.f32 1e-05, %v2830_v40  ;;  %v2831_v35 = vmul.f32 0.03125, %v2829_v41 }
0x164c   :  { %3802 = vrsqrt.f32 %v2832_v42  ;;  %v2833_v10 = vadd.f32 1e-05, %v2831_v35 }
0x164d   :  { %v2853_v55 = vpop.permute.xlu1 %2852 }
0x164e   :  { %3804 = vrsqrt.f32 %v2833_v10  ;;  %v2874_v4 = vsel %vm48_vm0, %v3808_v61, %v2853_v55 }
0x164f   :  { %v2888_v37 = vpop.permute.xlu0 %2887 }
0x1650   :  { %v2889_v51 = vadd.s32 %v2888_v37, %v2884_v13 }
0x1651   :  { %v2855_v56 = vpop.permute.xlu1 %2854 }
0x1652   :  { %vm2890_vm7 = vcmp.eq.s32.totalorder %v4014_v34, %v2889_v51  ;;  %v3705_v34 = vld [vmem:[%s4647_s7 + $0x8] sm:$0xff]   ;;  %v2875_v7 = vsel %vm48_vm0, %v3809_v12, %v2855_v56 }
0x1653   :  { %v3162_v33 = vsel %vm2890_vm7, 1.0, %v3834_v15 }
0x1655   :  { %v2861_v57 = vpop.permute.xlu1 %2860 }
0x1656   :  { %v3803_v43 = vpop.eup %3802  ;;  %v2877_v5 = vsel %vm2876_vm8, %v2874_v4, %v2861_v57 }
0x1657   :  { %v2836_v44 = vmul.f32 %v3803_v43, %v2820_v31 }
0x1658   :  { %v3805_v48 = vpop.eup %3804 }
0x1659   :  { %v2842_v6 = vmul.f32 %v3160_v53, %v2836_v44  ;;  %v2837_v50 = vmul.f32 %v3805_v48, %v2821_v45  ;;  %v2863_v60 = vpop.permute.xlu1 %2862 }
0x165a   :  { %v2878_v14 = vsel %vm2876_vm8, %v2875_v7, %v2863_v60 }
0x165b   :  { %v2848_v63 = vadd.f32 %v3161_v49, %v2842_v6  ;;  %v2843_v54 = vmul.f32 %v3160_v53, %v2837_v50 }
0x165d   :  { %2868 = vrot.lane.b32.xlu1 %v2848_v63, %s3839_s26  ;;  %v2849_v1 = vadd.f32 %v3161_v49, %v2843_v54 }
0x165f   :  { %v3569_v47 = vpack.c.bf16 %v2849_v1, %v2848_v63 }
0x1661   :  { %2870 = vrot.lane.b32.xlu1 %v2849_v1, %s3839_s26  ;;  %3570 = vmatpush3.bf16.msra.mxu1 %v3569_v47 }
0x1662   :  { %3560 = vmatprep.subr.bf16.mxu1 %v3834_v15 }
0x1664   :  { %3558 = vmatmul.mubr.msk.f32.vlgmr.msra.gmra.mrb[76].mxu1 %vm1121_vm5, %v3162_v33 }
0x1665   :  { %3561 = vmatpush3.bf16.msra.mxu1 %v3704_v62  ;;  %3564 = vmatprep.mubr.msk.bf16.mxu1 %vm3835_vm1, %v3834_v15 }
0x1666   :  { %3562 = vmatprep.subr.bf16.mxu1 %v3834_v15 }
0x1669   :  { %3563 = vmatpush3.bf16.msra.mxu1 %v3705_v34 }
0x16cf   :  { %v2869_v9 = vpop.permute.xlu1 %2868 }
0x16d0   :  { %v2880_v15 = vsel %vm2879_vm9, %v2877_v5, %v2869_v9 }
0x16d1   :  { %2882 = vst [vmem:[%s4648_s8] sm:$0xff] %v2880_v15 }
0x16d3   :  { %v2871_v8 = vpop.permute.xlu1 %2870 }
0x16d4   :  { %v2881_v16 = vsel %vm2879_vm9, %v2878_v14, %v2871_v8 }
0x16d5   :  { %2883 = vst [vmem:[%s4648_s8 + $0x8] sm:$0xff] %v2881_v16 }
0x1737   :  { %v2962_v18 = vpop.f32.mrb[76].mxu1 }
0x1738   :  { %v2966_v19 = vpack.c.bf16 %v2962_v18, %v2962_v18  ;;  %v3559_v20 = vpop.f32.mrb[77].mxu1 }
0x173a   :  { %3565 = vmatmul.mubr.msk.bf16.vlgmr.msra.gmra.mrb[80].mxu1 %vm48_vm0, %v2966_v19 }
0x180d   :  { %v3020_v0 = vpop.f32.mrb[80].mxu1 }
0x180e   :  { %3027 = vst.msk [vmem:[#allocation2] sm:$0x3] %vm3026_vm10, %v3020_v0  ;;  %v3566_v21 = vpop.f32.mrb[81].mxu1 }
0x180f   :  { %v3023_v22 = vpop.f32.mrb[82].mxu1 }
0x1810   :  { %3821 = shalt.err (!%p3818_p4)
}
0x1811   :  { %s3822_s10 = scalar_lea.hbm %s4649_s9, 32 }
0x1812   :  { %p3823_p5 = scmp.ne.s32.totalorder %s4649_s9, %s3822_s10  ;;  %p3826_p6 = scmp.lt.u32.totalorder %s3822_s10, %s4649_s9 }
0x1814   :  { %p3828_p7 = pnand %p3826_p6, %p3823_p5 }
0x1816   :  { %3831 = shalt.err (!%p3828_p7)
}
0x1817   :  { %3039 = dma.vmem_to_hbm [thread:$0]  %s3037_s4, 32, %s4649_s9, [#allocation3]   ;;  %v3567_v24 = vpop.f32.mrb[83].mxu1 }
0x1818   :  { %3832 = dma.done.wait [#allocation3], 32  }
0x1819   :  { %3833 = vsyncadd [#allocation3], 4294967264 }
0x181a   :  { %3045 = vsyncpa [#allocation3], 1 }

</bundles_post_ra>
